<compile_context>
chip_gen: v6e
topology: v6e:2x2x1
jax: 0.10.0
libtpu: 0.0.40
codegen_flags: <defaults>
</compile_context>

<pallas_src>
import functools

import jax
import jax.numpy as jnp
from jax import lax
from jax.experimental import pallas as pl
from jax.experimental.pallas import tpu as pltpu


def _round_up(n, m):
    return ((n + m - 1) // m) * m


def _lstm_classifier_kernel(x_ref, w_ih_ref, w_hh_ref, b_ref,
                            w_fc_ref, b_fc_ref,
                            out_ref,
                            xproj_ref,
                            *, hidden_pad, threshold, seq_len):
    """One batch-tile: full LSTM recurrence + mean pool + fc + sigmoid.

    x_ref:     (T, Bt, D)    bf16   (time-major batch tile)
    w_ih_ref:  (D, 4*Hp)     bf16
    w_hh_ref:  (Hp, 4*Hp)    bf16
    b_ref:     (1, 4*Hp)     f32    (bias_ih + bias_hh, gate-padded)
    w_fc_ref:  (1, Hp)       f32
    b_fc_ref:  (1, 1)        f32
    out_ref:   (Bt, 128)     f32    lane0=logits, lane1=probs, lane2=preds
    xproj_ref: (T, Bt, 4*Hp) f32    VMEM scratch for hoisted input projection
    """
    T = seq_len
    Hp = hidden_pad
    Bt = x_ref.shape[1]
    D = x_ref.shape[2]

    # ---- Hoisted input projection: one big MXU matmul for all timesteps ----
    x = x_ref[...]                                        # (T, Bt, D) bf16
    x2 = x.reshape(T * Bt, D)
    proj = jnp.dot(x2, w_ih_ref[...],
                   preferred_element_type=jnp.float32)    # (T*Bt, 4Hp) f32
    proj = proj + b_ref[...]                              # bias added once
    xproj_ref[...] = proj.reshape(T, Bt, 4 * Hp)

    w_hh = w_hh_ref[...]                                  # (Hp, 4Hp) bf16

    h0 = jnp.zeros((Bt, Hp), jnp.float32)
    c0 = jnp.zeros((Bt, Hp), jnp.float32)
    acc0 = jnp.zeros((Bt, Hp), jnp.float32)               # running sum of h_t

    def step(t, carry):
        h, c, acc = carry
        # Only the serial h @ W_hh matmul remains on the critical path.
        gates = xproj_ref[t] + jnp.dot(h.astype(w_hh.dtype), w_hh,
                                       preferred_element_type=jnp.float32)
        # PyTorch gate order: input, forget, cell(g), output.
        # Hp is a multiple of 128 -> lane-aligned (free) slices.
        i_g = jax.nn.sigmoid(gates[:, 0 * Hp:1 * Hp])
        f_g = jax.nn.sigmoid(gates[:, 1 * Hp:2 * Hp])
        g_g = jnp.tanh(gates[:, 2 * Hp:3 * Hp])
        o_g = jax.nn.sigmoid(gates[:, 3 * Hp:4 * Hp])
        c_new = f_g * c + i_g * g_g
        h_new = o_g * jnp.tanh(c_new)
        return h_new, c_new, acc + h_new

    unroll = True if T <= 32 else 4
    _, _, acc = lax.fori_loop(0, T, step, (h0, c0, acc0), unroll=unroll)

    pooled = acc * (1.0 / jnp.float32(T))                 # (Bt, Hp) mean over T

    # fc as VPU multiply + lane reduction (avoid an N=1 MXU matmul).
    # Padded lanes of pooled and w_fc are zero -> no contribution.
    logits = (jnp.sum(pooled * w_fc_ref[...], axis=-1, keepdims=True)
              + b_fc_ref[...])                            # (Bt, 1)
    probs = jax.nn.sigmoid(logits)
    preds = (probs >= jnp.float32(threshold)).astype(jnp.float32)

    # Pack into a single lane-dense slab: one unmasked (Bt, 128) store.
    lane = lax.broadcasted_iota(jnp.int32, (Bt, out_ref.shape[-1]), 1)
    packed = jnp.where(lane == 0, logits,
             jnp.where(lane == 1, probs,
             jnp.where(lane == 2, preds, jnp.float32(0.0))))
    out_ref[...] = packed


def lstm_classifier_forward(x, params, *, hidden_dim, threshold=0.5):
    """x: (B, T, D) float (batch_first). Returns dict of (B,) arrays."""
    # Mirror PyTorch heuristic: if x.size(1) == 7, input is (B, D=7, T).
    if x.shape[1] == 7:
        x = jnp.transpose(x, (0, 2, 1))
    x = x.astype(jnp.float32)

    B, T, D = x.shape
    H = hidden_dim
    Hp = _round_up(H, 128)                 # lane-aligned hidden size
    OUT_LANES = 128

    # Batch tile: >= 8 sublanes, capped so carried state stays in vregs.
    B_TILE = min(128, _round_up(max(B, 8), 8))
    B_pad = _round_up(B, B_TILE)
    if B_pad != B:
        x = jnp.pad(x, ((0, B_pad - B), (0, 0), (0, 0)))

    # Time-major layout so the kernel's per-step load is a leading-axis index.
    x_t = jnp.transpose(x, (1, 0, 2)).astype(jnp.bfloat16)      # (T, B_pad, D)

    # --- Weight packing: per-gate zero-padding H -> Hp (PyTorch order i,f,g,o)
    def pad_gate_rows(w):                  # (4H, K) -> (4Hp, K)
        K = w.shape[1]
        w4 = w.reshape(4, H, K)
        w4 = jnp.pad(w4, ((0, 0), (0, Hp - H), (0, 0)))
        return w4.reshape(4 * Hp, K)

    w_ih = pad_gate_rows(params["weight_ih"])                   # (4Hp, D)
    w_hh = pad_gate_rows(params["weight_hh"])                   # (4Hp, H)
    w_hh = jnp.pad(w_hh, ((0, 0), (0, Hp - H)))                 # (4Hp, Hp)
    b4 = (params["bias_ih"] + params["bias_hh"]).reshape(4, H)
    b4 = jnp.pad(b4, ((0, 0), (0, Hp - H)))
    b = b4.reshape(1, 4 * Hp).astype(jnp.float32)

    w_ih_t = w_ih.T.astype(jnp.bfloat16)                        # (D, 4Hp)
    w_hh_t = w_hh.T.astype(jnp.bfloat16)                        # (Hp, 4Hp)
    w_fc = jnp.pad(params["fc_weight"],
                   ((0, 0), (0, Hp - H))).astype(jnp.float32)   # (1, Hp)
    b_fc = params["fc_bias"].reshape(1, 1).astype(jnp.float32)  # (1, 1)

    kernel = functools.partial(_lstm_classifier_kernel,
                               hidden_pad=Hp, threshold=threshold, seq_len=T)

    grid = (B_pad // B_TILE,)

    packed = pl.pallas_call(
        kernel,
        out_shape=jax.ShapeDtypeStruct((B_pad, OUT_LANES), jnp.float32),
        grid_spec=pltpu.PrefetchScalarGridSpec(
            num_scalar_prefetch=0,
            grid=grid,
            in_specs=[
                # x tile: pipelined HBM->VMEM DMA per grid step.
                pl.BlockSpec((T, B_TILE, D), lambda i: (0, i, 0)),
                # Weights / biases: constant index_map -> stay VMEM-resident.
                pl.BlockSpec((D, 4 * Hp), lambda i: (0, 0)),
                pl.BlockSpec((Hp, 4 * Hp), lambda i: (0, 0)),
                pl.BlockSpec((1, 4 * Hp), lambda i: (0, 0)),
                pl.BlockSpec((1, Hp), lambda i: (0, 0)),
                pl.BlockSpec((1, 1), lambda i: (0, 0)),
            ],
            out_specs=pl.BlockSpec((B_TILE, OUT_LANES), lambda i: (i, 0)),
            scratch_shapes=[
                # Hoisted input projection (f32; switch to bf16 / T-chunking
                # if T*B_TILE*4Hp gets large relative to v7x's 64 MiB VMEM).
                pltpu.VMEM((T, B_TILE, 4 * Hp), jnp.float32),
            ],
        ),
        compiler_params=pltpu.CompilerParams(
            dimension_semantics=("parallel",)),
    )(x_t, w_ih_t, w_hh_t, b, w_fc, b_fc)

    return {
        "logits": packed[:B, 0],
        "probs": packed[:B, 1],
        "preds": packed[:B, 2],
    }


def init_params(key, input_dim, hidden_dim):
    """Deterministic init matching PyTorch nn.LSTM / nn.Linear shapes."""
    k = 1.0 / jnp.sqrt(jnp.float32(hidden_dim))
    keys = jax.random.split(key, 6)
    u = lambda kk, shape, bound: jax.random.uniform(
        kk, shape, jnp.float32, -bound, bound)
    return {
        "weight_ih": u(keys[0], (4 * hidden_dim, input_dim), k),
        "weight_hh": u(keys[1], (4 * hidden_dim, hidden_dim), k),
        "bias_ih":   u(keys[2], (4 * hidden_dim,), k),
        "bias_hh":   u(keys[3], (4 * hidden_dim,), k),
        "fc_weight": u(keys[4], (1, hidden_dim), k),
        "fc_bias":   u(keys[5], (1,), k),
    }


def _reference_forward(x, params, hidden_dim, threshold):
    """Pure-JAX f32 reference of the PyTorch mask=None forward."""
    if x.shape[1] == 7:
        x = jnp.transpose(x, (0, 2, 1))
    x = x.astype(jnp.float32)
    B, T, D = x.shape
    H = hidden_dim
    w_ih, w_hh = params["weight_ih"], params["weight_hh"]
    b = params["bias_ih"] + params["bias_hh"]
    h = jnp.zeros((B, H), jnp.float32)
    c = jnp.zeros((B, H), jnp.float32)
    hs = []
    for t in range(T):
        g = x[:, t, :] @ w_ih.T + h @ w_hh.T + b
        i = jax.nn.sigmoid(g[:, 0 * H:1 * H])
        f = jax.nn.sigmoid(g[:, 1 * H:2 * H])
        gg = jnp.tanh(g[:, 2 * H:3 * H])
        o = jax.nn.sigmoid(g[:, 3 * H:4 * H])
        c = f * c + i * gg
        h = o * jnp.tanh(c)
        hs.append(h)
    pooled = jnp.mean(jnp.stack(hs, axis=1), axis=1)
    logits = (pooled @ params["fc_weight"].T + params["fc_bias"])[:, 0]
    probs = jax.nn.sigmoid(logits)
    preds = (probs >= threshold).astype(jnp.float32)
    return {"logits": logits, "probs": probs, "preds": preds}


if __name__ == "__main__":
    B, T, D, H = 2, 8, 16, 32
    key = jax.random.PRNGKey(0)
    kx, kp = jax.random.split(key)

    x = jax.random.normal(kx, (B, T, D), jnp.float32)
    params = init_params(kp, input_dim=D, hidden_dim=H)

    out = lstm_classifier_forward(x, params, hidden_dim=H, threshold=0.5)
    jax.block_until_ready(out)

    assert out["logits"].shape == (B,)
    assert out["probs"].shape == (B,)
    assert out["preds"].shape == (B,)

    # Loose-tolerance sanity check vs. f32 reference (kernel matmuls run bf16).
    ref = _reference_forward(x, params, H, 0.5)
    assert jnp.allclose(out["logits"], ref["logits"], atol=1e-1), \
        (out["logits"], ref["logits"])
    assert jnp.allclose(out["probs"], ref["probs"], atol=5e-2), \
        (out["probs"], ref["probs"])

    print("KERNEL_OK")
</pallas_src>

<mosaic_0001>
module attributes {stable_mosaic.version = 11 : i64} {
  func.func @_lstm_classifier_kernel(%arg0: i32, %arg1: memref<8x8x16xbf16, #tpu.memory_space<vmem>>, %arg2: memref<16x512xbf16, #tpu.memory_space<vmem>>, %arg3: memref<128x512xbf16, #tpu.memory_space<vmem>>, %arg4: memref<1x512xf32, #tpu.memory_space<vmem>>, %arg5: memref<1x128xf32, #tpu.memory_space<vmem>>, %arg6: memref<1x1xf32, #tpu.memory_space<vmem>>, %arg7: memref<8x128xf32, #tpu.memory_space<vmem>>, %arg8: memref<8x8x512xf32, #tpu.memory_space<vmem>>) attributes {dimension_semantics = [#tpu.dimension_semantics<parallel>], iteration_bounds = array<i64: 1>, scalar_prefetch = 0 : i64, scratch_operands = 1 : i64, tpu.core_type = #tpu.core_type<tc>, window_params = [{transform_indices = @transform_0, window_bounds = array<i64: 8, 8, 16>}, {pipeline_mode = #tpu.pipeline_mode<synchronous>, transform_indices = @transform_1, window_bounds = array<i64: 16, 512>}, {pipeline_mode = #tpu.pipeline_mode<synchronous>, transform_indices = @transform_2, window_bounds = array<i64: 128, 512>}, {pipeline_mode = #tpu.pipeline_mode<synchronous>, transform_indices = @transform_3, window_bounds = array<i64: 1, 512>}, {pipeline_mode = #tpu.pipeline_mode<synchronous>, transform_indices = @transform_4, window_bounds = array<i64: 1, 128>}, {pipeline_mode = #tpu.pipeline_mode<synchronous>, transform_indices = @transform_5, window_bounds = array<i64: 1, 1>}, {transform_indices = @transform_6, window_bounds = array<i64: 8, 128>}]} {
    %c0 = arith.constant 0 : index
    %c0_0 = arith.constant 0 : index
    %c0_1 = arith.constant 0 : index
    %0 = vector.load %arg1[%c0, %c0_0, %c0_1] : memref<8x8x16xbf16, #tpu.memory_space<vmem>>, vector<8x8x16xbf16>
    %1 = vector.shape_cast %0 : vector<8x8x16xbf16> to vector<64x16xbf16>
    %c0_2 = arith.constant 0 : index
    %c0_3 = arith.constant 0 : index
    %2 = vector.load %arg2[%c0_2, %c0_3] : memref<16x512xbf16, #tpu.memory_space<vmem>>, vector<16x512xbf16>
    %cst = arith.constant dense<0.000000e+00> : vector<64x512xf32>
    %3 = tpu.matmul %1, %2, %cst {dimension_numbers = #tpu.dot_dimension_numbers<[1], [0], [0], [1], [0, 0, 1, 1], [], []>} : vector<64x16xbf16>, vector<16x512xbf16>, vector<64x512xf32> -> vector<64x512xf32>
    %c0_4 = arith.constant 0 : index
    %c0_5 = arith.constant 0 : index
    %4 = vector.load %arg4[%c0_4, %c0_5] : memref<1x512xf32, #tpu.memory_space<vmem>>, vector<1x512xf32>
    %5 = vector.broadcast %4 : vector<1x512xf32> to vector<64x512xf32>
    %6 = arith.addf %3, %5 : vector<64x512xf32>
    %7 = vector.shape_cast %6 : vector<64x512xf32> to vector<8x8x512xf32>
    %c0_6 = arith.constant 0 : index
    %c0_7 = arith.constant 0 : index
    %c0_8 = arith.constant 0 : index
    %8 = vector.load %arg8[%c0_6, %c0_7, %c0_8] : memref<8x8x512xf32, #tpu.memory_space<vmem>>, vector<8x8x512xf32>
    tpu.vector_store %arg8[%c0_6, %c0_7, %c0_8], %7 {strides = array<i32>} : memref<8x8x512xf32, #tpu.memory_space<vmem>>, vector<8x8x512xf32>,
    %c0_9 = arith.constant 0 : index
    %c0_10 = arith.constant 0 : index
    %9 = vector.load %arg3[%c0_9, %c0_10] : memref<128x512xbf16, #tpu.memory_space<vmem>>, vector<128x512xbf16>
    %cst_11 = arith.constant 0.000000e+00 : f32
    %10 = vector.broadcast %cst_11 : f32 to vector<8x128xf32>
    %cst_12 = arith.constant 0.000000e+00 : f32
    %11 = vector.broadcast %cst_12 : f32 to vector<8x128xf32>
    %cst_13 = arith.constant 0.000000e+00 : f32
    %12 = vector.broadcast %cst_13 : f32 to vector<8x128xf32>
    %c0_i32 = arith.constant 0 : i32
    %13 = arith.index_cast %c0_i32 : i32 to index
    %c0_14 = arith.constant 0 : index
    %c0_15 = arith.constant 0 : index
    %14 = vector.load %arg8[%13, %c0_14, %c0_15] : memref<8x8x512xf32, #tpu.memory_space<vmem>>, vector<1x8x512xf32>
    %15 = vector.shape_cast %14 : vector<1x8x512xf32> to vector<8x512xf32>
    %16 = arith.truncf %10 : vector<8x128xf32> to vector<8x128xbf16>
    %cst_16 = arith.constant dense<0.000000e+00> : vector<8x512xf32>
    %17 = tpu.matmul %16, %9, %cst_16 {dimension_numbers = #tpu.dot_dimension_numbers<[1], [0], [0], [1], [0, 0, 1, 1], [], []>} : vector<8x128xbf16>, vector<128x512xbf16>, vector<8x512xf32> -> vector<8x512xf32>
    %18 = arith.addf %15, %17 : vector<8x512xf32>
    %19 = vector.extract_strided_slice %18 {offsets = [0, 0], sizes = [8, 128], strides = [1, 1]} : vector<8x512xf32> to vector<8x128xf32>
    %20 = arith.negf %19 : vector<8x128xf32>
    %21 = math.exp %20 : vector<8x128xf32>
    %cst_17 = arith.constant 1.000000e+00 : f32
    %22 = vector.broadcast %cst_17 : f32 to vector<8x128xf32>
    %23 = arith.addf %22, %21 : vector<8x128xf32>
    %24 = arith.divf %22, %23 : vector<8x128xf32>
    %25 = vector.extract_strided_slice %18 {offsets = [0, 128], sizes = [8, 128], strides = [1, 1]} : vector<8x512xf32> to vector<8x128xf32>
    %26 = arith.negf %25 : vector<8x128xf32>
    %27 = math.exp %26 : vector<8x128xf32>
    %cst_18 = arith.constant 1.000000e+00 : f32
    %28 = vector.broadcast %cst_18 : f32 to vector<8x128xf32>
    %29 = arith.addf %28, %27 : vector<8x128xf32>
    %30 = arith.divf %28, %29 : vector<8x128xf32>
    %31 = vector.extract_strided_slice %18 {offsets = [0, 256], sizes = [8, 128], strides = [1, 1]} : vector<8x512xf32> to vector<8x128xf32>
    %32 = math.tanh %31 : vector<8x128xf32>
    %33 = vector.extract_strided_slice %18 {offsets = [0, 384], sizes = [8, 128], strides = [1, 1]} : vector<8x512xf32> to vector<8x128xf32>
    %34 = arith.negf %33 : vector<8x128xf32>
    %35 = math.exp %34 : vector<8x128xf32>
    %cst_19 = arith.constant 1.000000e+00 : f32
    %36 = vector.broadcast %cst_19 : f32 to vector<8x128xf32>
    %37 = arith.addf %36, %35 : vector<8x128xf32>
    %38 = arith.divf %36, %37 : vector<8x128xf32>
    %39 = arith.mulf %30, %11 : vector<8x128xf32>
    %40 = arith.mulf %24, %32 : vector<8x128xf32>
    %41 = arith.addf %39, %40 : vector<8x128xf32>
    %42 = math.tanh %41 : vector<8x128xf32>
    %43 = arith.mulf %38, %42 : vector<8x128xf32>
    %44 = arith.addf %12, %43 : vector<8x128xf32>
    %c1_i32 = arith.constant 1 : i32
    %45 = arith.index_cast %c1_i32 : i32 to index
    %c0_20 = arith.constant 0 : index
    %c0_21 = arith.constant 0 : index
    %46 = vector.load %arg8[%45, %c0_20, %c0_21] : memref<8x8x512xf32, #tpu.memory_space<vmem>>, vector<1x8x512xf32>
    %47 = vector.shape_cast %46 : vector<1x8x512xf32> to vector<8x512xf32>
    %48 = arith.truncf %43 : vector<8x128xf32> to vector<8x128xbf16>
    %cst_22 = arith.constant dense<0.000000e+00> : vector<8x512xf32>
    %49 = tpu.matmul %48, %9, %cst_22 {dimension_numbers = #tpu.dot_dimension_numbers<[1], [0], [0], [1], [0, 0, 1, 1], [], []>} : vector<8x128xbf16>, vector<128x512xbf16>, vector<8x512xf32> -> vector<8x512xf32>
    %50 = arith.addf %47, %49 : vector<8x512xf32>
    %51 = vector.extract_strided_slice %50 {offsets = [0, 0], sizes = [8, 128], strides = [1, 1]} : vector<8x512xf32> to vector<8x128xf32>
    %52 = arith.negf %51 : vector<8x128xf32>
    %53 = math.exp %52 : vector<8x128xf32>
    %cst_23 = arith.constant 1.000000e+00 : f32
    %54 = vector.broadcast %cst_23 : f32 to vector<8x128xf32>
    %55 = arith.addf %54, %53 : vector<8x128xf32>
    %56 = arith.divf %54, %55 : vector<8x128xf32>
    %57 = vector.extract_strided_slice %50 {offsets = [0, 128], sizes = [8, 128], strides = [1, 1]} : vector<8x512xf32> to vector<8x128xf32>
    %58 = arith.negf %57 : vector<8x128xf32>
    %59 = math.exp %58 : vector<8x128xf32>
    %cst_24 = arith.constant 1.000000e+00 : f32
    %60 = vector.broadcast %cst_24 : f32 to vector<8x128xf32>
    %61 = arith.addf %60, %59 : vector<8x128xf32>
    %62 = arith.divf %60, %61 : vector<8x128xf32>
    %63 = vector.extract_strided_slice %50 {offsets = [0, 256], sizes = [8, 128], strides = [1, 1]} : vector<8x512xf32> to vector<8x128xf32>
    %64 = math.tanh %63 : vector<8x128xf32>
    %65 = vector.extract_strided_slice %50 {offsets = [0, 384], sizes = [8, 128], strides = [1, 1]} : vector<8x512xf32> to vector<8x128xf32>
    %66 = arith.negf %65 : vector<8x128xf32>
    %67 = math.exp %66 : vector<8x128xf32>
    %cst_25 = arith.constant 1.000000e+00 : f32
    %68 = vector.broadcast %cst_25 : f32 to vector<8x128xf32>
    %69 = arith.addf %68, %67 : vector<8x128xf32>
    %70 = arith.divf %68, %69 : vector<8x128xf32>
    %71 = arith.mulf %62, %41 : vector<8x128xf32>
    %72 = arith.mulf %56, %64 : vector<8x128xf32>
    %73 = arith.addf %71, %72 : vector<8x128xf32>
    %74 = math.tanh %73 : vector<8x128xf32>
    %75 = arith.mulf %70, %74 : vector<8x128xf32>
    %76 = arith.addf %44, %75 : vector<8x128xf32>
    %c2_i32 = arith.constant 2 : i32
    %77 = arith.index_cast %c2_i32 : i32 to index
    %c0_26 = arith.constant 0 : index
    %c0_27 = arith.constant 0 : index
    %78 = vector.load %arg8[%77, %c0_26, %c0_27] : memref<8x8x512xf32, #tpu.memory_space<vmem>>, vector<1x8x512xf32>
    %79 = vector.shape_cast %78 : vector<1x8x512xf32> to vector<8x512xf32>
    %80 = arith.truncf %75 : vector<8x128xf32> to vector<8x128xbf16>
    %cst_28 = arith.constant dense<0.000000e+00> : vector<8x512xf32>
    %81 = tpu.matmul %80, %9, %cst_28 {dimension_numbers = #tpu.dot_dimension_numbers<[1], [0], [0], [1], [0, 0, 1, 1], [], []>} : vector<8x128xbf16>, vector<128x512xbf16>, vector<8x512xf32> -> vector<8x512xf32>
    %82 = arith.addf %79, %81 : vector<8x512xf32>
    %83 = vector.extract_strided_slice %82 {offsets = [0, 0], sizes = [8, 128], strides = [1, 1]} : vector<8x512xf32> to vector<8x128xf32>
    %84 = arith.negf %83 : vector<8x128xf32>
    %85 = math.exp %84 : vector<8x128xf32>
    %cst_29 = arith.constant 1.000000e+00 : f32
    %86 = vector.broadcast %cst_29 : f32 to vector<8x128xf32>
    %87 = arith.addf %86, %85 : vector<8x128xf32>
    %88 = arith.divf %86, %87 : vector<8x128xf32>
    %89 = vector.extract_strided_slice %82 {offsets = [0, 128], sizes = [8, 128], strides = [1, 1]} : vector<8x512xf32> to vector<8x128xf32>
    %90 = arith.negf %89 : vector<8x128xf32>
    %91 = math.exp %90 : vector<8x128xf32>
    %cst_30 = arith.constant 1.000000e+00 : f32
    %92 = vector.broadcast %cst_30 : f32 to vector<8x128xf32>
    %93 = arith.addf %92, %91 : vector<8x128xf32>
    %94 = arith.divf %92, %93 : vector<8x128xf32>
    %95 = vector.extract_strided_slice %82 {offsets = [0, 256], sizes = [8, 128], strides = [1, 1]} : vector<8x512xf32> to vector<8x128xf32>
    %96 = math.tanh %95 : vector<8x128xf32>
    %97 = vector.extract_strided_slice %82 {offsets = [0, 384], sizes = [8, 128], strides = [1, 1]} : vector<8x512xf32> to vector<8x128xf32>
    %98 = arith.negf %97 : vector<8x128xf32>
    %99 = math.exp %98 : vector<8x128xf32>
    %cst_31 = arith.constant 1.000000e+00 : f32
    %100 = vector.broadcast %cst_31 : f32 to vector<8x128xf32>
    %101 = arith.addf %100, %99 : vector<8x128xf32>
    %102 = arith.divf %100, %101 : vector<8x128xf32>
    %103 = arith.mulf %94, %73 : vector<8x128xf32>
    %104 = arith.mulf %88, %96 : vector<8x128xf32>
    %105 = arith.addf %103, %104 : vector<8x128xf32>
    %106 = math.tanh %105 : vector<8x128xf32>
    %107 = arith.mulf %102, %106 : vector<8x128xf32>
    %108 = arith.addf %76, %107 : vector<8x128xf32>
    %c3_i32 = arith.constant 3 : i32
    %109 = arith.index_cast %c3_i32 : i32 to index
    %c0_32 = arith.constant 0 : index
    %c0_33 = arith.constant 0 : index
    %110 = vector.load %arg8[%109, %c0_32, %c0_33] : memref<8x8x512xf32, #tpu.memory_space<vmem>>, vector<1x8x512xf32>
    %111 = vector.shape_cast %110 : vector<1x8x512xf32> to vector<8x512xf32>
    %112 = arith.truncf %107 : vector<8x128xf32> to vector<8x128xbf16>
    %cst_34 = arith.constant dense<0.000000e+00> : vector<8x512xf32>
    %113 = tpu.matmul %112, %9, %cst_34 {dimension_numbers = #tpu.dot_dimension_numbers<[1], [0], [0], [1], [0, 0, 1, 1], [], []>} : vector<8x128xbf16>, vector<128x512xbf16>, vector<8x512xf32> -> vector<8x512xf32>
    %114 = arith.addf %111, %113 : vector<8x512xf32>
    %115 = vector.extract_strided_slice %114 {offsets = [0, 0], sizes = [8, 128], strides = [1, 1]} : vector<8x512xf32> to vector<8x128xf32>
    %116 = arith.negf %115 : vector<8x128xf32>
    %117 = math.exp %116 : vector<8x128xf32>
    %cst_35 = arith.constant 1.000000e+00 : f32
    %118 = vector.broadcast %cst_35 : f32 to vector<8x128xf32>
    %119 = arith.addf %118, %117 : vector<8x128xf32>
    %120 = arith.divf %118, %119 : vector<8x128xf32>
    %121 = vector.extract_strided_slice %114 {offsets = [0, 128], sizes = [8, 128], strides = [1, 1]} : vector<8x512xf32> to vector<8x128xf32>
    %122 = arith.negf %121 : vector<8x128xf32>
    %123 = math.exp %122 : vector<8x128xf32>
    %cst_36 = arith.constant 1.000000e+00 : f32
    %124 = vector.broadcast %cst_36 : f32 to vector<8x128xf32>
    %125 = arith.addf %124, %123 : vector<8x128xf32>
    %126 = arith.divf %124, %125 : vector<8x128xf32>
    %127 = vector.extract_strided_slice %114 {offsets = [0, 256], sizes = [8, 128], strides = [1, 1]} : vector<8x512xf32> to vector<8x128xf32>
    %128 = math.tanh %127 : vector<8x128xf32>
    %129 = vector.extract_strided_slice %114 {offsets = [0, 384], sizes = [8, 128], strides = [1, 1]} : vector<8x512xf32> to vector<8x128xf32>
    %130 = arith.negf %129 : vector<8x128xf32>
    %131 = math.exp %130 : vector<8x128xf32>
    %cst_37 = arith.constant 1.000000e+00 : f32
    %132 = vector.broadcast %cst_37 : f32 to vector<8x128xf32>
    %133 = arith.addf %132, %131 : vector<8x128xf32>
    %134 = arith.divf %132, %133 : vector<8x128xf32>
    %135 = arith.mulf %126, %105 : vector<8x128xf32>
    %136 = arith.mulf %120, %128 : vector<8x128xf32>
    %137 = arith.addf %135, %136 : vector<8x128xf32>
    %138 = math.tanh %137 : vector<8x128xf32>
    %139 = arith.mulf %134, %138 : vector<8x128xf32>
    %140 = arith.addf %108, %139 : vector<8x128xf32>
    %c4_i32 = arith.constant 4 : i32
    %141 = arith.index_cast %c4_i32 : i32 to index
    %c0_38 = arith.constant 0 : index
    %c0_39 = arith.constant 0 : index
    %142 = vector.load %arg8[%141, %c0_38, %c0_39] : memref<8x8x512xf32, #tpu.memory_space<vmem>>, vector<1x8x512xf32>
    %143 = vector.shape_cast %142 : vector<1x8x512xf32> to vector<8x512xf32>
    %144 = arith.truncf %139 : vector<8x128xf32> to vector<8x128xbf16>
    %cst_40 = arith.constant dense<0.000000e+00> : vector<8x512xf32>
    %145 = tpu.matmul %144, %9, %cst_40 {dimension_numbers = #tpu.dot_dimension_numbers<[1], [0], [0], [1], [0, 0, 1, 1], [], []>} : vector<8x128xbf16>, vector<128x512xbf16>, vector<8x512xf32> -> vector<8x512xf32>
    %146 = arith.addf %143, %145 : vector<8x512xf32>
    %147 = vector.extract_strided_slice %146 {offsets = [0, 0], sizes = [8, 128], strides = [1, 1]} : vector<8x512xf32> to vector<8x128xf32>
    %148 = arith.negf %147 : vector<8x128xf32>
    %149 = math.exp %148 : vector<8x128xf32>
    %cst_41 = arith.constant 1.000000e+00 : f32
    %150 = vector.broadcast %cst_41 : f32 to vector<8x128xf32>
    %151 = arith.addf %150, %149 : vector<8x128xf32>
    %152 = arith.divf %150, %151 : vector<8x128xf32>
    %153 = vector.extract_strided_slice %146 {offsets = [0, 128], sizes = [8, 128], strides = [1, 1]} : vector<8x512xf32> to vector<8x128xf32>
    %154 = arith.negf %153 : vector<8x128xf32>
    %155 = math.exp %154 : vector<8x128xf32>
    %cst_42 = arith.constant 1.000000e+00 : f32
    %156 = vector.broadcast %cst_42 : f32 to vector<8x128xf32>
    %157 = arith.addf %156, %155 : vector<8x128xf32>
    %158 = arith.divf %156, %157 : vector<8x128xf32>
    %159 = vector.extract_strided_slice %146 {offsets = [0, 256], sizes = [8, 128], strides = [1, 1]} : vector<8x512xf32> to vector<8x128xf32>
    %160 = math.tanh %159 : vector<8x128xf32>
    %161 = vector.extract_strided_slice %146 {offsets = [0, 384], sizes = [8, 128], strides = [1, 1]} : vector<8x512xf32> to vector<8x128xf32>
    %162 = arith.negf %161 : vector<8x128xf32>
    %163 = math.exp %162 : vector<8x128xf32>
    %cst_43 = arith.constant 1.000000e+00 : f32
    %164 = vector.broadcast %cst_43 : f32 to vector<8x128xf32>
    %165 = arith.addf %164, %163 : vector<8x128xf32>
    %166 = arith.divf %164, %165 : vector<8x128xf32>
    %167 = arith.mulf %158, %137 : vector<8x128xf32>
    %168 = arith.mulf %152, %160 : vector<8x128xf32>
    %169 = arith.addf %167, %168 : vector<8x128xf32>
    %170 = math.tanh %169 : vector<8x128xf32>
    %171 = arith.mulf %166, %170 : vector<8x128xf32>
    %172 = arith.addf %140, %171 : vector<8x128xf32>
    %c5_i32 = arith.constant 5 : i32
    %173 = arith.index_cast %c5_i32 : i32 to index
    %c0_44 = arith.constant 0 : index
    %c0_45 = arith.constant 0 : index
    %174 = vector.load %arg8[%173, %c0_44, %c0_45] : memref<8x8x512xf32, #tpu.memory_space<vmem>>, vector<1x8x512xf32>
    %175 = vector.shape_cast %174 : vector<1x8x512xf32> to vector<8x512xf32>
    %176 = arith.truncf %171 : vector<8x128xf32> to vector<8x128xbf16>
    %cst_46 = arith.constant dense<0.000000e+00> : vector<8x512xf32>
    %177 = tpu.matmul %176, %9, %cst_46 {dimension_numbers = #tpu.dot_dimension_numbers<[1], [0], [0], [1], [0, 0, 1, 1], [], []>} : vector<8x128xbf16>, vector<128x512xbf16>, vector<8x512xf32> -> vector<8x512xf32>
    %178 = arith.addf %175, %177 : vector<8x512xf32>
    %179 = vector.extract_strided_slice %178 {offsets = [0, 0], sizes = [8, 128], strides = [1, 1]} : vector<8x512xf32> to vector<8x128xf32>
    %180 = arith.negf %179 : vector<8x128xf32>
    %181 = math.exp %180 : vector<8x128xf32>
    %cst_47 = arith.constant 1.000000e+00 : f32
    %182 = vector.broadcast %cst_47 : f32 to vector<8x128xf32>
    %183 = arith.addf %182, %181 : vector<8x128xf32>
    %184 = arith.divf %182, %183 : vector<8x128xf32>
    %185 = vector.extract_strided_slice %178 {offsets = [0, 128], sizes = [8, 128], strides = [1, 1]} : vector<8x512xf32> to vector<8x128xf32>
    %186 = arith.negf %185 : vector<8x128xf32>
    %187 = math.exp %186 : vector<8x128xf32>
    %cst_48 = arith.constant 1.000000e+00 : f32
    %188 = vector.broadcast %cst_48 : f32 to vector<8x128xf32>
    %189 = arith.addf %188, %187 : vector<8x128xf32>
    %190 = arith.divf %188, %189 : vector<8x128xf32>
    %191 = vector.extract_strided_slice %178 {offsets = [0, 256], sizes = [8, 128], strides = [1, 1]} : vector<8x512xf32> to vector<8x128xf32>
    %192 = math.tanh %191 : vector<8x128xf32>
    %193 = vector.extract_strided_slice %178 {offsets = [0, 384], sizes = [8, 128], strides = [1, 1]} : vector<8x512xf32> to vector<8x128xf32>
    %194 = arith.negf %193 : vector<8x128xf32>
    %195 = math.exp %194 : vector<8x128xf32>
    %cst_49 = arith.constant 1.000000e+00 : f32
    %196 = vector.broadcast %cst_49 : f32 to vector<8x128xf32>
    %197 = arith.addf %196, %195 : vector<8x128xf32>
    %198 = arith.divf %196, %197 : vector<8x128xf32>
    %199 = arith.mulf %190, %169 : vector<8x128xf32>
    %200 = arith.mulf %184, %192 : vector<8x128xf32>
    %201 = arith.addf %199, %200 : vector<8x128xf32>
    %202 = math.tanh %201 : vector<8x128xf32>
    %203 = arith.mulf %198, %202 : vector<8x128xf32>
    %204 = arith.addf %172, %203 : vector<8x128xf32>
    %c6_i32 = arith.constant 6 : i32
    %205 = arith.index_cast %c6_i32 : i32 to index
    %c0_50 = arith.constant 0 : index
    %c0_51 = arith.constant 0 : index
    %206 = vector.load %arg8[%205, %c0_50, %c0_51] : memref<8x8x512xf32, #tpu.memory_space<vmem>>, vector<1x8x512xf32>
    %207 = vector.shape_cast %206 : vector<1x8x512xf32> to vector<8x512xf32>
    %208 = arith.truncf %203 : vector<8x128xf32> to vector<8x128xbf16>
    %cst_52 = arith.constant dense<0.000000e+00> : vector<8x512xf32>
    %209 = tpu.matmul %208, %9, %cst_52 {dimension_numbers = #tpu.dot_dimension_numbers<[1], [0], [0], [1], [0, 0, 1, 1], [], []>} : vector<8x128xbf16>, vector<128x512xbf16>, vector<8x512xf32> -> vector<8x512xf32>
    %210 = arith.addf %207, %209 : vector<8x512xf32>
    %211 = vector.extract_strided_slice %210 {offsets = [0, 0], sizes = [8, 128], strides = [1, 1]} : vector<8x512xf32> to vector<8x128xf32>
    %212 = arith.negf %211 : vector<8x128xf32>
    %213 = math.exp %212 : vector<8x128xf32>
    %cst_53 = arith.constant 1.000000e+00 : f32
    %214 = vector.broadcast %cst_53 : f32 to vector<8x128xf32>
    %215 = arith.addf %214, %213 : vector<8x128xf32>
    %216 = arith.divf %214, %215 : vector<8x128xf32>
    %217 = vector.extract_strided_slice %210 {offsets = [0, 128], sizes = [8, 128], strides = [1, 1]} : vector<8x512xf32> to vector<8x128xf32>
    %218 = arith.negf %217 : vector<8x128xf32>
    %219 = math.exp %218 : vector<8x128xf32>
    %cst_54 = arith.constant 1.000000e+00 : f32
    %220 = vector.broadcast %cst_54 : f32 to vector<8x128xf32>
    %221 = arith.addf %220, %219 : vector<8x128xf32>
    %222 = arith.divf %220, %221 : vector<8x128xf32>
    %223 = vector.extract_strided_slice %210 {offsets = [0, 256], sizes = [8, 128], strides = [1, 1]} : vector<8x512xf32> to vector<8x128xf32>
    %224 = math.tanh %223 : vector<8x128xf32>
    %225 = vector.extract_strided_slice %210 {offsets = [0, 384], sizes = [8, 128], strides = [1, 1]} : vector<8x512xf32> to vector<8x128xf32>
    %226 = arith.negf %225 : vector<8x128xf32>
    %227 = math.exp %226 : vector<8x128xf32>
    %cst_55 = arith.constant 1.000000e+00 : f32
    %228 = vector.broadcast %cst_55 : f32 to vector<8x128xf32>
    %229 = arith.addf %228, %227 : vector<8x128xf32>
    %230 = arith.divf %228, %229 : vector<8x128xf32>
    %231 = arith.mulf %222, %201 : vector<8x128xf32>
    %232 = arith.mulf %216, %224 : vector<8x128xf32>
    %233 = arith.addf %231, %232 : vector<8x128xf32>
    %234 = math.tanh %233 : vector<8x128xf32>
    %235 = arith.mulf %230, %234 : vector<8x128xf32>
    %236 = arith.addf %204, %235 : vector<8x128xf32>
    %c7_i32 = arith.constant 7 : i32
    %237 = arith.index_cast %c7_i32 : i32 to index
    %c0_56 = arith.constant 0 : index
    %c0_57 = arith.constant 0 : index
    %238 = vector.load %arg8[%237, %c0_56, %c0_57] : memref<8x8x512xf32, #tpu.memory_space<vmem>>, vector<1x8x512xf32>
    %239 = vector.shape_cast %238 : vector<1x8x512xf32> to vector<8x512xf32>
    %240 = arith.truncf %235 : vector<8x128xf32> to vector<8x128xbf16>
    %cst_58 = arith.constant dense<0.000000e+00> : vector<8x512xf32>
    %241 = tpu.matmul %240, %9, %cst_58 {dimension_numbers = #tpu.dot_dimension_numbers<[1], [0], [0], [1], [0, 0, 1, 1], [], []>} : vector<8x128xbf16>, vector<128x512xbf16>, vector<8x512xf32> -> vector<8x512xf32>
    %242 = arith.addf %239, %241 : vector<8x512xf32>
    %243 = vector.extract_strided_slice %242 {offsets = [0, 0], sizes = [8, 128], strides = [1, 1]} : vector<8x512xf32> to vector<8x128xf32>
    %244 = arith.negf %243 : vector<8x128xf32>
    %245 = math.exp %244 : vector<8x128xf32>
    %cst_59 = arith.constant 1.000000e+00 : f32
    %246 = vector.broadcast %cst_59 : f32 to vector<8x128xf32>
    %247 = arith.addf %246, %245 : vector<8x128xf32>
    %248 = arith.divf %246, %247 : vector<8x128xf32>
    %249 = vector.extract_strided_slice %242 {offsets = [0, 128], sizes = [8, 128], strides = [1, 1]} : vector<8x512xf32> to vector<8x128xf32>
    %250 = arith.negf %249 : vector<8x128xf32>
    %251 = math.exp %250 : vector<8x128xf32>
    %cst_60 = arith.constant 1.000000e+00 : f32
    %252 = vector.broadcast %cst_60 : f32 to vector<8x128xf32>
    %253 = arith.addf %252, %251 : vector<8x128xf32>
    %254 = arith.divf %252, %253 : vector<8x128xf32>
    %255 = vector.extract_strided_slice %242 {offsets = [0, 256], sizes = [8, 128], strides = [1, 1]} : vector<8x512xf32> to vector<8x128xf32>
    %256 = math.tanh %255 : vector<8x128xf32>
    %257 = vector.extract_strided_slice %242 {offsets = [0, 384], sizes = [8, 128], strides = [1, 1]} : vector<8x512xf32> to vector<8x128xf32>
    %258 = arith.negf %257 : vector<8x128xf32>
    %259 = math.exp %258 : vector<8x128xf32>
    %cst_61 = arith.constant 1.000000e+00 : f32
    %260 = vector.broadcast %cst_61 : f32 to vector<8x128xf32>
    %261 = arith.addf %260, %259 : vector<8x128xf32>
    %262 = arith.divf %260, %261 : vector<8x128xf32>
    %263 = arith.mulf %254, %233 : vector<8x128xf32>
    %264 = arith.mulf %248, %256 : vector<8x128xf32>
    %265 = arith.addf %263, %264 : vector<8x128xf32>
    %266 = math.tanh %265 : vector<8x128xf32>
    %267 = arith.mulf %262, %266 : vector<8x128xf32>
    %268 = arith.addf %236, %267 : vector<8x128xf32>
    %c8_i32 = arith.constant 8 : i32
    %cst_62 = arith.constant 1.000000e+00 : f32
    %cst_63 = arith.constant 8.000000e+00 : f32
    %269 = arith.divf %cst_62, %cst_63 : f32
    %270 = vector.broadcast %269 : f32 to vector<8x128xf32>
    %271 = arith.mulf %268, %270 : vector<8x128xf32>
    %c0_64 = arith.constant 0 : index
    %c0_65 = arith.constant 0 : index
    %272 = vector.load %arg5[%c0_64, %c0_65] : memref<1x128xf32, #tpu.memory_space<vmem>>, vector<1x128xf32>
    %273 = vector.broadcast %272 : vector<1x128xf32> to vector<8x128xf32>
    %274 = arith.mulf %271, %273 : vector<8x128xf32>
    %cst_66 = arith.constant dense<0.000000e+00> : vector<8xf32>
    %275 = vector.multi_reduction <add>, %274, %cst_66 [1] : vector<8x128xf32> to vector<8xf32>
    %276 = vector.shape_cast %275 : vector<8xf32> to vector<8x1xf32>
    %c0_67 = arith.constant 0 : index
    %c0_68 = arith.constant 0 : index
    %277 = vector.load %arg6[%c0_67, %c0_68] : memref<1x1xf32, #tpu.memory_space<vmem>>, vector<1x1xf32>
    %278 = vector.broadcast %277 : vector<1x1xf32> to vector<8x1xf32>
    %279 = arith.addf %276, %278 : vector<8x1xf32>
    %280 = arith.negf %279 : vector<8x1xf32>
    %281 = math.exp %280 : vector<8x1xf32>
    %cst_69 = arith.constant 1.000000e+00 : f32
    %282 = vector.broadcast %cst_69 : f32 to vector<8x1xf32>
    %283 = arith.addf %282, %281 : vector<8x1xf32>
    %284 = arith.divf %282, %283 : vector<8x1xf32>
    %cst_70 = arith.constant 5.000000e-01 : f32
    %285 = vector.broadcast %cst_70 : f32 to vector<8x1xf32>
    %286 = arith.cmpf oge, %284, %285 : vector<8x1xf32>
    %287 = arith.extui %286 : vector<8x1xi1> to vector<8x1xi32>
    %288 = arith.sitofp %287 : vector<8x1xi32> to vector<8x1xf32>
    %289 = tpu.iota {dimensions = array<i32: 1>} : vector<8x128xi32>
    %c0_i32_71 = arith.constant 0 : i32
    %290 = vector.broadcast %c0_i32_71 : i32 to vector<8x128xi32>
    %291 = arith.cmpi eq, %289, %290 : vector<8x128xi32>
    %c1_i32_72 = arith.constant 1 : i32
    %292 = vector.broadcast %c1_i32_72 : i32 to vector<8x128xi32>
    %293 = arith.cmpi eq, %289, %292 : vector<8x128xi32>
    %c2_i32_73 = arith.constant 2 : i32
    %294 = vector.broadcast %c2_i32_73 : i32 to vector<8x128xi32>
    %295 = arith.cmpi eq, %289, %294 : vector<8x128xi32>
    %cst_74 = arith.constant 0.000000e+00 : f32
    %296 = vector.shape_cast %288 : vector<8x1xf32> to vector<8x1xf32>
    %297 = vector.broadcast %296 : vector<8x1xf32> to vector<8x128xf32>
    %298 = vector.broadcast %cst_74 : f32 to vector<8x128xf32>
    %299 = arith.select %295, %297, %298 : vector<8x128xi1>, vector<8x128xf32>
    %300 = vector.shape_cast %284 : vector<8x1xf32> to vector<8x1xf32>
    %301 = vector.broadcast %300 : vector<8x1xf32> to vector<8x128xf32>
    %302 = arith.select %293, %301, %299 : vector<8x128xi1>, vector<8x128xf32>
    %303 = vector.shape_cast %279 : vector<8x1xf32> to vector<8x1xf32>
    %304 = vector.broadcast %303 : vector<8x1xf32> to vector<8x128xf32>
    %305 = arith.select %291, %304, %302 : vector<8x128xi1>, vector<8x128xf32>
    %c0_75 = arith.constant 0 : index
    %c0_76 = arith.constant 0 : index
    %306 = vector.load %arg7[%c0_75, %c0_76] : memref<8x128xf32, #tpu.memory_space<vmem>>, vector<8x128xf32>
    tpu.vector_store %arg7[%c0_75, %c0_76], %305 {strides = array<i32>} : memref<8x128xf32, #tpu.memory_space<vmem>>, vector<8x128xf32>,
    return
  }
  func.func @transform_0(%arg0: i32) -> (i32, i32, i32) {
    %c0_i32 = arith.constant 0 : i32
    %c0_i32_0 = arith.constant 0 : i32
    %c0_i32_1 = arith.constant 0 : i32
    return %c0_i32, %arg0, %c0_i32_0 : i32, i32, i32
  }
  func.func @transform_1(%arg0: i32) -> (i32, i32) {
    %c0_i32 = arith.constant 0 : i32
    %c0_i32_0 = arith.constant 0 : i32
    %c0_i32_1 = arith.constant 0 : i32
    return %c0_i32, %c0_i32_0 : i32, i32
  }
  func.func @transform_2(%arg0: i32) -> (i32, i32) {
    %c0_i32 = arith.constant 0 : i32
    %c0_i32_0 = arith.constant 0 : i32
    %c0_i32_1 = arith.constant 0 : i32
    return %c0_i32, %c0_i32_0 : i32, i32
  }
  func.func @transform_3(%arg0: i32) -> (i32, i32) {
    %c0_i32 = arith.constant 0 : i32
    %c0_i32_0 = arith.constant 0 : i32
    %c0_i32_1 = arith.constant 0 : i32
    return %c0_i32, %c0_i32_0 : i32, i32
  }
  func.func @transform_4(%arg0: i32) -> (i32, i32) {
    %c0_i32 = arith.constant 0 : i32
    %c0_i32_0 = arith.constant 0 : i32
    %c0_i32_1 = arith.constant 0 : i32
    return %c0_i32, %c0_i32_0 : i32, i32
  }
  func.func @transform_5(%arg0: i32) -> (i32, i32) {
    %c0_i32 = arith.constant 0 : i32
    %c0_i32_0 = arith.constant 0 : i32
    %c0_i32_1 = arith.constant 0 : i32
    return %c0_i32, %c0_i32_0 : i32, i32
  }
  func.func @transform_6(%arg0: i32) -> (i32, i32) {
    %c0_i32 = arith.constant 0 : i32
    %c0_i32_0 = arith.constant 0 : i32
    return %arg0, %c0_i32 : i32, i32
  }
}

</mosaic_0001>

<bundles_post_ra>
// kernel: tpu_custom_call.1
= control target key start
LH: loop header
LB: loop body
LE: loop exit
PB: predicated region body
PF: predicated region fallthrough
CT: control target
= control target key end

     0   :  { %s2549_s0 = inlined_call_operand.hbm [shape: bf16[8,8,16], index: 0, kind: input, shape index: {}]   ;;  %s2550_s1 = inlined_call_operand.hbm [shape: bf16[16,512], index: 1, kind: input, shape index: {}]   ;;  %s2551_s2 = inlined_call_operand.hbm [shape: bf16[128,512], index: 2, kind: input, shape index: {}]   ;;  %s2552_s3 = inlined_call_operand.vmem [shape: f32[1,512], index: 3, kind: input, shape index: {}]   ;;  %s2553_s4 = inlined_call_operand.vmem [shape: f32[1,128], index: 4, kind: input, shape index: {}]   ;;  %s2554_s5 = inlined_call_operand.<no memory space> [shape: f32[1,1], index: 5, kind: input, shape index: {}]   ;;  %s2555_s6 = inlined_call_operand.hbm [shape: f32[8,128], index: 6, kind: output, shape index: {}]  }
   0x1   :  { %v11_v0 = vstv %s2554_s5 }
   0x2   :  { %12 = vst [vmem:[#allocation3] sm:$0x1] %v11_v0 }
   0x3   :  { %13 = vsyncpa [#allocation5], 0 }
   0x4   :  { %14 = vsyncpa [#allocation8], 0 }
   0x5   :  { %15 = vsyncpa [#allocation6], 0  ;;  %s1923_s23 = smov [#allocation7]  }
   0x6   :  { %s33_s24 = sshll.u32 %s1923_s23, 4  ;;  %s34_s24 = int_to_ptr.vmem [resolvable:$true] %s33_s24 }
   0x7   :  { %s1845_s25 = scalar_lea.vmem %s34_s24, 512  ;;  %p1850_p1 = scmp.lt.s32.totalorder %s34_s24, %s34_s24 }
   0x8   :  { %p1846_p0 = scmp.ne.s32.totalorder %s34_s24, %s1845_s25  ;;  %p1851_p2 = scmp.lt.s32.totalorder %s1845_s25, %s1845_s25 }
   0xa   :  { %p1852_p3 = por %p1851_p2, %p1850_p1 }
   0xc   :  { %p1853_p4 = pnand %p1852_p3, %p1846_p0 }
   0xe   :  { %1856 = shalt.err (!%p1853_p4)
}
   0xf   :  { %s1924_s26 = smov 256   ;;  %s1925_s27 = smov 16  }
  0x10   :  { %39 = dma.hbm_to_vmem [thread:$0]  %s2550_s1, 512, %s34_s24, [#allocation8], %s1924_s26, %s1924_s26, %s1925_s27  }
  0x11   :  { %s1926_s5 = smov [#allocation4]  }
  0x12   :  { %s21_s30 = sshll.u32 %s1926_s5, 4  ;;  %s22_s30 = int_to_ptr.vmem [resolvable:$true] %s21_s30 }
  0x13   :  { %s1865_s7 = scalar_lea.vmem %s22_s30, 512  ;;  %p1870_p6 = scmp.lt.s32.totalorder %s22_s30, %s22_s30 }
  0x14   :  { %p1866_p5 = scmp.ne.s32.totalorder %s22_s30, %s1865_s7  ;;  %p1871_p7 = scmp.lt.s32.totalorder %s1865_s7, %s1865_s7 }
  0x16   :  { %p1872_p8 = por %p1871_p7, %p1870_p6 }
  0x18   :  { %p1873_p9 = pnand %p1872_p8, %p1866_p5 }
  0x1a   :  { %1876 = shalt.err (!%p1873_p9)
}
  0x1b   :  { %s1927_s8 = smov 64   ;;  %s1928_s9 = smov 4  }
  0x1c   :  { %27 = dma.hbm_to_vmem [thread:$0]  %s2549_s0, 512, %s22_s30, [#allocation5], %s1927_s8, %s1927_s8, %s1928_s9  }
  0x1d   :  { %s1929_s12 = smov [#allocation9]  }
  0x1e   :  { %s45_s13 = sshll.u32 %s1929_s12, 4  ;;  %s46_s13 = int_to_ptr.vmem [resolvable:$true] %s45_s13 }
  0x1f   :  { %s1885_s1 = scalar_lea.vmem %s46_s13, 4096  ;;  %p1890_p11 = scmp.lt.s32.totalorder %s46_s13, %s46_s13 }
  0x20   :  { %p1886_p10 = scmp.ne.s32.totalorder %s46_s13, %s1885_s1  ;;  %p1891_p12 = scmp.lt.s32.totalorder %s1885_s1, %s1885_s1 }
  0x22   :  { %p1892_p13 = por %p1891_p12, %p1890_p11 }
  0x24   :  { %p1893_p0 = pnand %p1892_p13, %p1886_p10 }
  0x26   :  { %1896 = shalt.err (!%p1893_p0)
}
  0x27   :  { %51 = dma.hbm_to_vmem [thread:$0]  %s2551_s2, 4096, %s46_s13, [#allocation8], %s1924_s26, %s1924_s26, %s1925_s27  }
  0x28   :  { %1917 = dma.done.wait [#allocation5], 512  }
  0x29   :  { %1918 = vsyncadd [#allocation5], 4294966784 }
  0x2a   :  { %1919 = dma.done.wait [#allocation8], 4608  }
  0x2b   :  { %1920 = vsyncadd [#allocation8], 4294962688  ;;  %v2557_v1 = vmov 0   ;;  %v1615_v2 = vld [vmem:[#allocation7 + $0x4] ss:$16 sps:$4 sm:$0xff]   ;;  %vm142_vm0 = vcmask 130048   ;;  %v2556_v42 = vlaneseq }
  0x2c   :  { %187 = vmatprep.mubr.bf16.mxu0 %v2557_v1  ;;  %260 = vmatprep.mubr.bf16.mxu1 %v2557_v1  ;;  %v1617_v3 = vld [vmem:[#allocation7 + $0xc] ss:$16 sps:$4 sm:$0xff]   ;;  %v1619_v4 = vld [vmem:[#allocation7] ss:$16 sps:$4 sm:$0xff]   ;;  %v1620_v5 = vld [vmem:[#allocation7 + $0x8] ss:$16 sps:$4 sm:$0xff]  }
  0x2d   :  { %1614 = vset.pattern.permute.xlu1 %v2557_v1  ;;  %1613 = vset.pattern.permute.xlu0 %v2557_v1  ;;  %v1621_v6 = vld [vmem:[#allocation4] sm:$0xff]   ;;  %v1986_v8 = vld [vmem:[#allocation9 + $0xec] ss:$16 sps:$4 sm:$0xff]   ;;  %v1991_v10 = vld [vmem:[#allocation9 + $0xe8] ss:$16 sps:$4 sm:$0xff]   ;;  %v83_v43 = vshrl.u32 %v2556_v42, 7 }
  0x2e   :  { %169 = vmatprep.subr.bf16.mxu0 %v1615_v2  ;;  %242 = vmatprep.subr.bf16.mxu1 %v1617_v3  ;;  %v1984_v7 = vld [vmem:[#allocation9 + $0xe4] ss:$16 sps:$4 sm:$0xff]   ;;  %v1988_v9 = vld [vmem:[#allocation9 + $0xe0] ss:$16 sps:$4 sm:$0xff]   ;;  %v1999_v12 = vld [vmem:[#allocation9 + $0xcc] ss:$16 sps:$4 sm:$0xff]  }
  0x2f   :  { %170 = vmatpush1.bf16.msra.mxu0 %v1619_v4  ;;  %243 = vmatpush1.bf16.msra.mxu1 %v1620_v5  ;;  %v1995_v11 = vld [vmem:[#allocation9 + $0xc4] ss:$16 sps:$4 sm:$0xff]   ;;  %v2001_v13 = vld [vmem:[#allocation9 + $0xc0] ss:$16 sps:$4 sm:$0xff]   ;;  %v2003_v14 = vld [vmem:[#allocation9 + $0xc8] ss:$16 sps:$4 sm:$0xff]  }
  0x30   :  { %529 = vmatprep.subr.bf16.mxu0 %v1984_v7  ;;  %570 = vmatprep.subr.bf16.mxu1 %v1986_v8  ;;  %v1634_v15 = vld [vmem:[#allocation4 + $0x8] sm:$0xff]   ;;  %v2009_v16 = vld [vmem:[#allocation9 + $0xa4] ss:$16 sps:$4 sm:$0xff]   ;;  %v2015_v18 = vld [vmem:[#allocation9 + $0xa0] ss:$16 sps:$4 sm:$0xff]   ;;  %v92_v44 = vsub.s32 2, %v83_v43 }
  0x31   :  { %v2012_v17 = vld [vmem:[#allocation9 + $0xac] ss:$16 sps:$4 sm:$0xff]   ;;  %v2017_v19 = vld [vmem:[#allocation9 + $0xa8] ss:$16 sps:$4 sm:$0xff]   ;;  %v2021_v20 = vld [vmem:[#allocation9 + $0x84] ss:$16 sps:$4 sm:$0xff]  }
  0x32   :  { %1535 = vmatmul.mubr.msk.bf16.vlgmr.msra.gmra.mxu0 %vm142_vm0, %v1621_v6  ;;  %1539 = vmatmul.mubr.msk.bf16.vlgmr.msra.gmra.mxu1 %vm142_vm0, %v1621_v6  ;;  %v2024_v21 = vld [vmem:[#allocation9 + $0x8c] ss:$16 sps:$4 sm:$0xff]   ;;  %v2028_v22 = vld [vmem:[#allocation9 + $0x80] ss:$16 sps:$4 sm:$0xff]   ;;  %v2031_v23 = vld [vmem:[#allocation9 + $0x88] ss:$16 sps:$4 sm:$0xff]  }
  0x33   :  { %530 = vmatpush1.bf16.msra.mxu0 %v1988_v9  ;;  %571 = vmatpush1.bf16.msra.mxu1 %v1991_v10  ;;  %v2036_v24 = vld [vmem:[#allocation9 + $0x64] ss:$16 sps:$4 sm:$0xff]   ;;  %v2040_v25 = vld [vmem:[#allocation9 + $0x6c] ss:$16 sps:$4 sm:$0xff]   ;;  %v2043_v27 = vld [vmem:[#allocation9 + $0x60] ss:$16 sps:$4 sm:$0xff]  }
  0x34   :  { %531 = vmatprep.subr.bf16.mxu0 %v1995_v11  ;;  %572 = vmatprep.subr.bf16.mxu1 %v1999_v12  ;;  %v1647_v26 = vld [vmem:[#allocation4 + $0x10] sm:$0xff]   ;;  %v2047_v28 = vld [vmem:[#allocation9 + $0x68] ss:$16 sps:$4 sm:$0xff]   ;;  %v2052_v30 = vld [vmem:[#allocation9 + $0x4c] ss:$16 sps:$4 sm:$0xff]   ;;  %v84_v45 = vsub.s32 0, %v83_v43 }
  0x35   :  { %197 = vmatprep.mubr.bf16.mxu0 %v2557_v1  ;;  %270 = vmatprep.mubr.bf16.mxu1 %v2557_v1  ;;  %v2049_v29 = vld [vmem:[#allocation9 + $0x44] ss:$16 sps:$4 sm:$0xff]   ;;  %v2057_v31 = vld [vmem:[#allocation9 + $0x40] ss:$16 sps:$4 sm:$0xff]   ;;  %v2059_v32 = vld [vmem:[#allocation9 + $0x48] ss:$16 sps:$4 sm:$0xff]  }
  0x36   :  { %v2064_v33 = vld [vmem:[#allocation9 + $0x24] ss:$16 sps:$4 sm:$0xff]   ;;  %v2068_v34 = vld [vmem:[#allocation9 + $0x2c] ss:$16 sps:$4 sm:$0xff]   ;;  %v2071_v36 = vld [vmem:[#allocation9 + $0x20] ss:$16 sps:$4 sm:$0xff]  }
  0x37   :  { %532 = vmatpush1.bf16.msra.mxu0 %v2001_v13  ;;  %573 = vmatpush1.bf16.msra.mxu1 %v2003_v14  ;;  %v1660_v35 = vld [vmem:[#allocation4 + $0x18] sm:$0xff]   ;;  %v2077_v38 = vld [vmem:[#allocation9 + $0x4] ss:$16 sps:$4 sm:$0xff]   ;;  %v2085_v40 = vld [vmem:[#allocation9] ss:$16 sps:$4 sm:$0xff]   ;;  %v96_v46 = vsub.s32 3, %v83_v43 }
  0x38   :  { %533 = vmatprep.subr.bf16.mxu0 %v2009_v16  ;;  %574 = vmatprep.subr.bf16.mxu1 %v2012_v17  ;;  %v2075_v37 = vld [vmem:[#allocation9 + $0x28] ss:$16 sps:$4 sm:$0xff]   ;;  %v2080_v39 = vld [vmem:[#allocation9 + $0xc] ss:$16 sps:$4 sm:$0xff]   ;;  %v88_v51 = vsub.s32 1, %v83_v43 }
  0x39   :  { %v2090_v41 = vld [vmem:[#allocation9 + $0x8] ss:$16 sps:$4 sm:$0xff]   ;;  %v80_v47 = vld [vmem:[%s2552_s3] sm:$0xf] }
  0x3a   :  { %1536 = vmatmul.mubr.msk.bf16.gmra.mxu0 %vm142_vm0, %v1634_v15  ;;  %1540 = vmatmul.mubr.msk.bf16.gmra.mxu1 %vm142_vm0, %v1634_v15  ;;  %v2142_v50 = vrot.slane %v80_v47, %v92_v44  ;;  %v85_v54 = vrot.slane %v80_v47, %v84_v45  ;;  %v2148_v55 = vrot.slane %v80_v47, %v96_v46 }
  0x3b   :  { %534 = vmatpush1.bf16.msra.mxu0 %v2015_v18  ;;  %207 = vmatprep.mubr.bf16.mxu0 %v2557_v1  ;;  %v89_v58 = vrot.slane %v80_v47, %v88_v51 }
  0x3c   :  { %575 = vmatpush1.bf16.msra.mxu1 %v2017_v19  ;;  %535 = vmatprep.subr.bf16.mxu0 %v2021_v20 }
  0x3d   :  { %576 = vmatprep.subr.bf16.mxu1 %v2024_v21  ;;  %280 = vmatprep.mubr.bf16.mxu1 %v2557_v1 }
  0x3f   :  { %536 = vmatpush1.bf16.msra.mxu0 %v2028_v22 }
  0x40   :  { %577 = vmatpush1.bf16.msra.mxu1 %v2031_v23  ;;  %537 = vmatprep.subr.bf16.mxu0 %v2036_v24 }
  0x41   :  { %578 = vmatprep.subr.bf16.mxu1 %v2040_v25 }
  0x42   :  { %1537 = vmatmul.mubr.msk.bf16.gmra.mxu0 %vm142_vm0, %v1647_v26  ;;  %1541 = vmatmul.mubr.msk.bf16.gmra.mxu1 %vm142_vm0, %v1647_v26 }
  0x43   :  { %538 = vmatpush1.bf16.msra.mxu0 %v2043_v27  ;;  %217 = vmatprep.mubr.bf16.mxu0 %v2557_v1 }
  0x44   :  { %579 = vmatpush1.bf16.msra.mxu1 %v2047_v28  ;;  %539 = vmatprep.subr.bf16.mxu0 %v2049_v29 }
  0x45   :  { %580 = vmatprep.subr.bf16.mxu1 %v2052_v30  ;;  %290 = vmatprep.mubr.bf16.mxu1 %v2557_v1 }
  0x47   :  { %540 = vmatpush1.bf16.msra.mxu0 %v2057_v31 }
  0x48   :  { %581 = vmatpush1.bf16.msra.mxu1 %v2059_v32  ;;  %541 = vmatprep.subr.bf16.mxu0 %v2064_v33 }
  0x49   :  { %582 = vmatprep.subr.bf16.mxu1 %v2068_v34 }
  0x4a   :  { %1538 = vmatmul.mubr.msk.bf16.gmra.mxu0 %vm142_vm0, %v1660_v35  ;;  %1542 = vmatmul.mubr.msk.bf16.gmra.mxu1 %vm142_vm0, %v1660_v35 }
  0x4b   :  { %542 = vmatpush1.bf16.msra.mxu0 %v2071_v36  ;;  %561 = vmatprep.mubr.bf16.mxu0 %v2557_v1 }
  0x4c   :  { %583 = vmatpush1.bf16.msra.mxu1 %v2075_v37  ;;  %543 = vmatprep.subr.bf16.mxu0 %v2077_v38 }
  0x4d   :  { %584 = vmatprep.subr.bf16.mxu1 %v2080_v39  ;;  %602 = vmatprep.mubr.bf16.mxu1 %v2557_v1 }
  0x4f   :  { %544 = vmatpush1.bf16.msra.mxu0 %v2085_v40 }
  0x50   :  { %585 = vmatpush1.bf16.msra.mxu1 %v2090_v41  ;;  %646 = vmatprep.subr.bf16.mxu0 %v1984_v7 }
  0x51   :  { %687 = vmatprep.subr.bf16.mxu1 %v1986_v8 }
  0x52   :  { %562 = vmatmul.mubr.bf16.vlgmr.msra.gmra.mxu0 %v2557_v1 }
  0x53   :  { %603 = vmatmul.mubr.bf16.vlgmr.msra.gmra.mxu1 %v2557_v1  ;;  %647 = vmatpush1.bf16.msra.mxu0 %v1988_v9 }
  0x54   :  { %688 = vmatpush1.bf16.msra.mxu1 %v1991_v10  ;;  %648 = vmatprep.subr.bf16.mxu0 %v1995_v11 }
  0x55   :  { %689 = vmatprep.subr.bf16.mxu1 %v1999_v12  ;;  %678 = vmatprep.mubr.bf16.mxu0 %v2557_v1 }
  0x56   :  { %719 = vmatprep.mubr.bf16.mxu1 %v2557_v1 }
  0x57   :  { %649 = vmatpush1.bf16.msra.mxu0 %v2001_v13 }
  0x58   :  { %690 = vmatpush1.bf16.msra.mxu1 %v2003_v14  ;;  %650 = vmatprep.subr.bf16.mxu0 %v2009_v16 }
  0x59   :  { %691 = vmatprep.subr.bf16.mxu1 %v2012_v17 }
  0x5b   :  { %651 = vmatpush1.bf16.msra.mxu0 %v2015_v18 }
  0x5c   :  { %692 = vmatpush1.bf16.msra.mxu1 %v2017_v19  ;;  %652 = vmatprep.subr.bf16.mxu0 %v2021_v20 }
  0x5d   :  { %693 = vmatprep.subr.bf16.mxu1 %v2024_v21 }
  0x5f   :  { %653 = vmatpush1.bf16.msra.mxu0 %v2028_v22 }
  0x60   :  { %694 = vmatpush1.bf16.msra.mxu1 %v2031_v23  ;;  %654 = vmatprep.subr.bf16.mxu0 %v2036_v24 }
  0x61   :  { %695 = vmatprep.subr.bf16.mxu1 %v2040_v25 }
  0x63   :  { %655 = vmatpush1.bf16.msra.mxu0 %v2043_v27 }
  0x64   :  { %696 = vmatpush1.bf16.msra.mxu1 %v2047_v28  ;;  %656 = vmatprep.subr.bf16.mxu0 %v2049_v29 }
  0x65   :  { %697 = vmatprep.subr.bf16.mxu1 %v2052_v30 }
  0x67   :  { %657 = vmatpush1.bf16.msra.mxu0 %v2057_v31 }
  0x68   :  { %698 = vmatpush1.bf16.msra.mxu1 %v2059_v32  ;;  %658 = vmatprep.subr.bf16.mxu0 %v2064_v33 }
  0x69   :  { %699 = vmatprep.subr.bf16.mxu1 %v2068_v34 }
  0x6b   :  { %659 = vmatpush1.bf16.msra.mxu0 %v2071_v36 }
  0x6c   :  { %700 = vmatpush1.bf16.msra.mxu1 %v2075_v37  ;;  %660 = vmatprep.subr.bf16.mxu0 %v2077_v38 }
  0x6d   :  { %701 = vmatprep.subr.bf16.mxu1 %v2080_v39 }
  0x6f   :  { %661 = vmatpush1.bf16.msra.mxu0 %v2085_v40 }
  0x70   :  { %702 = vmatpush1.bf16.msra.mxu1 %v2090_v41  ;;  %763 = vmatprep.subr.bf16.mxu0 %v1984_v7 }
  0x71   :  { %804 = vmatprep.subr.bf16.mxu1 %v1986_v8 }
  0xf2   :  { %v2138_v48 = vpop.f32.mrf.mxu0  ;;  %v2140_v49 = vpop.f32.mrf.mxu1 }
  0xf4   :  { %v2144_v52 = vpop.f32.mrf.mxu0  ;;  %v2146_v53 = vpop.f32.mrf.mxu1 }
  0xf6   :  { %v193_v56 = vpop.f32.mrf.mxu0  ;;  %v266_v57 = vpop.f32.mrf.mxu1 }
  0xf7   :  { %v2150_v59 = vadd.f32 %v193_v56, %v85_v54  ;;  %v2153_v60 = vadd.f32 %v266_v57, %v2142_v50 }
  0xf8   :  { %v195_v61 = vpop.f32.mrf.mxu0  ;;  %v268_v62 = vpop.f32.mrf.mxu1 }
  0xf9   :  { %v2155_v63 = vadd.f32 %v195_v61, %v89_v58  ;;  %v2158_v0 = vadd.f32 %v268_v62, %v2148_v55 }
  0xfa   :  { %v199_v2 = vpop.f32.mrf.mxu0  ;;  %v272_v3 = vpop.f32.mrf.mxu1 }
  0xfb   :  { %v2160_v4 = vadd.f32 %v199_v2, %v85_v54  ;;  %v2163_v5 = vadd.f32 %v272_v3, %v2142_v50 }
  0xfc   :  { %v201_v6 = vpop.f32.mrf.mxu0  ;;  %v274_v15 = vpop.f32.mrf.mxu1 }
  0xfd   :  { %2559 = vst [vmem:[#allocation14_spill] sm:$0xff] %v2163_v5  ;;  %v2165_v26 = vadd.f32 %v201_v6, %v89_v58  ;;  %v2168_v35 = vadd.f32 %v274_v15, %v2148_v55 }
  0xfe   :  { %v203_v43 = vpop.f32.mrf.mxu0  ;;  %v276_v44 = vpop.f32.mrf.mxu1 }
  0xff   :  { %v2170_v45 = vadd.f32 %v203_v43, %v85_v54  ;;  %v2173_v46 = vadd.f32 %v276_v44, %v2142_v50 }
 0x100   :  { %v205_v47 = vpop.f32.mrf.mxu0  ;;  %v278_v51 = vpop.f32.mrf.mxu1 }
 0x101   :  { %2560 = vst [vmem:[#allocation15_spill] sm:$0xff] %v2170_v45  ;;  %2561 = vst [vmem:[#allocation16_spill] sm:$0xff] %v2173_v46  ;;  %v2175_v56 = vadd.f32 %v205_v47, %v89_v58  ;;  %v2178_v57 = vadd.f32 %v278_v51, %v2148_v55 }
 0x102   :  { %v209_v61 = vpop.f32.mrf.mxu0  ;;  %v282_v62 = vpop.f32.mrf.mxu1 }
 0x103   :  { %2562 = vst [vmem:[#allocation17_spill] sm:$0xff] %v2175_v56  ;;  %2563 = vst [vmem:[#allocation18_spill] sm:$0xff] %v2178_v57  ;;  %v2180_v2 = vadd.f32 %v209_v61, %v85_v54  ;;  %v2183_v3 = vadd.f32 %v282_v62, %v2142_v50 }
 0x104   :  { %v211_v6 = vpop.f32.mrf.mxu0  ;;  %v284_v15 = vpop.f32.mrf.mxu1 }
 0x105   :  { %2564 = vst [vmem:[#allocation19_spill] sm:$0xff] %v2180_v2  ;;  %2565 = vst [vmem:[#allocation20_spill] sm:$0xff] %v2183_v3  ;;  %v2185_v43 = vadd.f32 %v211_v6, %v89_v58  ;;  %v2188_v44 = vadd.f32 %v284_v15, %v2148_v55 }
 0x106   :  { %v213_v42 = vpop.f32.mrf.mxu0  ;;  %v286_v47 = vpop.f32.mrf.mxu1 }
 0x107   :  { %2566 = vst [vmem:[#allocation21_spill] sm:$0xff] %v2185_v43  ;;  %2567 = vst [vmem:[#allocation22_spill] sm:$0xff] %v2188_v44  ;;  %v2190_v1 = vadd.f32 %v213_v42, %v85_v54  ;;  %v2193_v51 = vadd.f32 %v286_v47, %v2142_v50 }
 0x108   :  { %v215_v46 = vpop.f32.mrf.mxu0  ;;  %v288_v61 = vpop.f32.mrf.mxu1 }
 0x109   :  { %2568 = vst [vmem:[#allocation23_spill] sm:$0xff] %v2190_v1  ;;  %2569 = vst [vmem:[#allocation24_spill] sm:$0xff] %v2193_v51  ;;  %v2195_v2 = vadd.f32 %v215_v46, %v89_v58  ;;  %v2198_v62 = vadd.f32 %v288_v61, %v2148_v55 }
 0x10a   :  { %v219_v3 = vpop.f32.mrf.mxu0  ;;  %v292_v6 = vpop.f32.mrf.mxu1 }
 0x10b   :  { %2570 = vst [vmem:[#allocation25_spill] sm:$0xff] %v2195_v2  ;;  %2571 = vst [vmem:[#allocation26_spill] sm:$0xff] %v2198_v62  ;;  %v2200_v43 = vadd.f32 %v219_v3, %v85_v54  ;;  %v2203_v15 = vadd.f32 %v292_v6, %v2142_v50 }
 0x10c   :  { %v221_v44 = vpop.f32.mrf.mxu0  ;;  %v294_v42 = vpop.f32.mrf.mxu1 }
 0x10d   :  { %2572 = vst [vmem:[#allocation27_spill] sm:$0xff] %v2200_v43  ;;  %2573 = vst [vmem:[#allocation28_spill] sm:$0xff] %v2203_v15  ;;  %v2205_v1 = vadd.f32 %v221_v44, %v89_v58  ;;  %v2208_v47 = vadd.f32 %v294_v42, %v2148_v55  ;;  %v190_v43 = vadd.f32 %v2138_v48, %v85_v54 }
 0x10e   :  { %v223_v51 = vpop.f32.mrf.mxu0  ;;  %v296_v46 = vpop.f32.mrf.mxu1  ;;  %v192_v42 = vadd.f32 %v2144_v52, %v89_v58  ;;  %v263_v52 = vadd.f32 %v2140_v49, %v2142_v50 }
 0x10f   :  { %2574 = vst [vmem:[#allocation29_spill] sm:$0xff] %v2205_v1  ;;  %2575 = vst [vmem:[#allocation30_spill] sm:$0xff] %v2208_v47  ;;  %v2210_v2 = vadd.f32 %v223_v51, %v85_v54  ;;  %v2213_v61 = vadd.f32 %v296_v46, %v2142_v50  ;;  %v265_v54 = vadd.f32 %v2146_v53, %v2148_v55 }
 0x110   :  { %v225_v62 = vpop.f32.mrf.mxu0  ;;  %v298_v3 = vpop.f32.mrf.mxu1 }
 0x111   :  { %2576 = vst [vmem:[#allocation31_spill] sm:$0xff] %v2210_v2  ;;  %2577 = vst [vmem:[#allocation32_spill] sm:$0xff] %v2213_v61  ;;  %v2216_v6 = vadd.f32 %v225_v62, %v89_v58  ;;  %v2219_v15 = vadd.f32 %v298_v3, %v2148_v55 }
 0x112   :  { %v563_v44 = vpop.f32.mrf.mxu0 }
 0x113   :  { %v611_v47 = vadd.f32 %v563_v44, %v190_v43  ;;  %v604_v1 = vpop.f32.mrf.mxu1 }
 0x114   :  { %v565_v57 = vpop.f32.mrf.mxu0  ;;  %v613_v3 = vadd.f32 %v604_v1, %v263_v52 }
 0x115   :  { %v1575_v51 = vmul.f32 -1.442695, %v611_v47  ;;  %v612_v2 = vadd.f32 %v565_v57, %v192_v42  ;;  %v606_v56 = vpop.f32.mrf.mxu1 }
 0x116   :  { %v567_v46 = vpop.f32.mrf.mxu0  ;;  %v614_v62 = vadd.f32 %v606_v56, %v265_v54 }
 0x117   :  { %1673 = vpow2.f32 %v1575_v51  ;;  %v1576_v61 = vmul.f32 -1.442695, %v612_v2  ;;  %v608_v45 = vpop.f32.mrf.mxu1  ;;  %v2578_v46 = vmov 0  }
 0x118   :  { %v568_v5 = vpop.f32.mrf.mxu0  ;;  %v1577_v58 = vmul.f32 -1.442695, %v614_v62 }
 0x119   :  { %1675 = vpow2.f32 %v1576_v61  ;;  %v609_v48 = vpop.f32.mrf.mxu1 }
 0x11a   :  { %1677 = vpow2.f32 %v1577_v58 }
 0x124   :  { %v1674_v43 = vpop.eup %1673 }
 0x125   :  { %v618_v47 = vadd.f32 1.0, %v1674_v43 }
 0x126   :  { %v1676_v57 = vpop.eup %1675 }
 0x127   :  { %1679 = vrcp.f32 %v618_v47  ;;  %v624_v44 = vadd.f32 1.0, %v1676_v57  ;;  %v1678_v5 = vpop.eup %1677 }
 0x128   :  { %1681 = vtanh.f32 %v613_v3  ;;  %v631_v42 = vadd.f32 1.0, %v1678_v5 }
 0x129   :  { %1683 = vrcp.f32 %v624_v44 }
 0x12a   :  { %1685 = vrcp.f32 %v631_v42 }
 0x134   :  { %v1680_v45 = vpop.eup %1679 }
 0x135   :  { %v1682_v2 = vpop.eup %1681 }
 0x136   :  { %v1684_v61 = vpop.eup %1683  ;;  %v635_v55 = vmul.f32 %v1682_v2, %v1680_v45 }
 0x137   :  { %v634_v53 = vmul.f32 0.0, %v1684_v61  ;;  %v1686_v1 = vpop.eup %1685 }
 0x139   :  { %v2226_v56 = vadd.f32 %v635_v55, %v634_v53 }
 0x13b   :  { %1687 = vtanh.f32 %v2226_v56 }
 0x148   :  { %v1688_v49 = vpop.eup %1687 }
 0x149   :  { %v2229_v50 = vmul.f32 %v1688_v49, %v1686_v1 }
 0x14b   :  { %v645_v51 = vpack.c.bf16 %v2229_v50, %v2229_v50 }
 0x14d   :  { %679 = vmatmul.mubr.bf16.vlgmr.msra.gmra.mxu0 %v645_v51  ;;  %720 = vmatmul.mubr.bf16.vlgmr.msra.gmra.mxu1 %v645_v51 }
 0x14e   :  { %764 = vmatpush1.bf16.msra.mxu0 %v1988_v9  ;;  %805 = vmatpush1.bf16.msra.mxu1 %v1991_v10 }
 0x14f   :  { %765 = vmatprep.subr.bf16.mxu0 %v1995_v11  ;;  %806 = vmatprep.subr.bf16.mxu1 %v1999_v12 }
 0x150   :  { %795 = vmatprep.mubr.bf16.mxu0 %v2578_v46  ;;  %836 = vmatprep.mubr.bf16.mxu1 %v2578_v46 }
 0x152   :  { %766 = vmatpush1.bf16.msra.mxu0 %v2001_v13  ;;  %807 = vmatpush1.bf16.msra.mxu1 %v2003_v14 }
 0x153   :  { %767 = vmatprep.subr.bf16.mxu0 %v2009_v16  ;;  %808 = vmatprep.subr.bf16.mxu1 %v2012_v17 }
 0x156   :  { %768 = vmatpush1.bf16.msra.mxu0 %v2015_v18  ;;  %809 = vmatpush1.bf16.msra.mxu1 %v2017_v19 }
 0x157   :  { %769 = vmatprep.subr.bf16.mxu0 %v2021_v20  ;;  %810 = vmatprep.subr.bf16.mxu1 %v2024_v21 }
 0x15a   :  { %770 = vmatpush1.bf16.msra.mxu0 %v2028_v22  ;;  %811 = vmatpush1.bf16.msra.mxu1 %v2031_v23 }
 0x15b   :  { %771 = vmatprep.subr.bf16.mxu0 %v2036_v24  ;;  %812 = vmatprep.subr.bf16.mxu1 %v2040_v25 }
 0x15e   :  { %772 = vmatpush1.bf16.msra.mxu0 %v2043_v27  ;;  %813 = vmatpush1.bf16.msra.mxu1 %v2047_v28 }
 0x15f   :  { %773 = vmatprep.subr.bf16.mxu0 %v2049_v29  ;;  %814 = vmatprep.subr.bf16.mxu1 %v2052_v30 }
 0x162   :  { %774 = vmatpush1.bf16.msra.mxu0 %v2057_v31  ;;  %815 = vmatpush1.bf16.msra.mxu1 %v2059_v32 }
 0x163   :  { %775 = vmatprep.subr.bf16.mxu0 %v2064_v33  ;;  %816 = vmatprep.subr.bf16.mxu1 %v2068_v34 }
 0x166   :  { %776 = vmatpush1.bf16.msra.mxu0 %v2071_v36  ;;  %817 = vmatpush1.bf16.msra.mxu1 %v2075_v37 }
 0x167   :  { %777 = vmatprep.subr.bf16.mxu0 %v2077_v38  ;;  %818 = vmatprep.subr.bf16.mxu1 %v2080_v39 }
 0x16a   :  { %778 = vmatpush1.bf16.msra.mxu0 %v2085_v40  ;;  %819 = vmatpush1.bf16.msra.mxu1 %v2090_v41 }
 0x16b   :  { %880 = vmatprep.subr.bf16.mxu0 %v1984_v7  ;;  %921 = vmatprep.subr.bf16.mxu1 %v1986_v8 }
 0x20d   :  { %v680_v48 = vpop.f32.mrf.mxu0  ;;  %v721_v54 = vpop.f32.mrf.mxu1 }
 0x20e   :  { %v728_v62 = vadd.f32 %v680_v48, %v2150_v59  ;;  %v730_v61 = vadd.f32 %v721_v54, %v2153_v60 }
 0x20f   :  { %v682_v52 = vpop.f32.mrf.mxu0  ;;  %v723_v58 = vpop.f32.mrf.mxu1 }
 0x210   :  { %v1578_v43 = vmul.f32 -1.442695, %v728_v62  ;;  %v729_v3 = vadd.f32 %v682_v52, %v2155_v63  ;;  %v731_v2 = vadd.f32 %v723_v58, %v2158_v0 }
 0x211   :  { %v684_v47 = vpop.f32.mrf.mxu0  ;;  %v725_v57 = vpop.f32.mrf.mxu1 }
 0x212   :  { %1689 = vpow2.f32 %v1578_v43  ;;  %v1579_v44 = vmul.f32 -1.442695, %v729_v3  ;;  %v1580_v42 = vmul.f32 -1.442695, %v731_v2 }
 0x213   :  { %v685_v5 = vpop.f32.mrf.mxu0  ;;  %v726_v45 = vpop.f32.mrf.mxu1 }
 0x214   :  { %1691 = vpow2.f32 %v1579_v44 }
 0x215   :  { %1693 = vtanh.f32 %v730_v61 }
 0x216   :  { %1695 = vpow2.f32 %v1580_v42 }
 0x21f   :  { %v1690_v53 = vpop.eup %1689 }
 0x220   :  { %v735_v55 = vadd.f32 1.0, %v1690_v53 }
 0x221   :  { %v1692_v59 = vpop.eup %1691 }
 0x222   :  { %1697 = vrcp.f32 %v735_v55  ;;  %v741_v1 = vadd.f32 1.0, %v1692_v59  ;;  %v1694_v63 = vpop.eup %1693 }
 0x223   :  { %v1696_v49 = vpop.eup %1695 }
 0x224   :  { %1699 = vrcp.f32 %v741_v1  ;;  %v748_v52 = vadd.f32 1.0, %v1696_v49 }
 0x226   :  { %1701 = vrcp.f32 %v748_v52 }
 0x22f   :  { %v1698_v51 = vpop.eup %1697 }
 0x230   :  { %v752_v48 = vmul.f32 %v1698_v51, %v1694_v63  ;;  %v2579_v63 = vld [vmem:[#allocation14_spill] sm:$0xff] }
 0x231   :  { %v1700_v62 = vpop.eup %1699 }
 0x232   :  { %v751_v43 = vmul.f32 %v1700_v62, %v2226_v56 }
 0x233   :  { %v1702_v60 = vpop.eup %1701 }
 0x234   :  { %v2272_v0 = vadd.f32 %v752_v48, %v751_v43 }
 0x236   :  { %1703 = vtanh.f32 %v2272_v0 }
 0x243   :  { %v1704_v54 = vpop.eup %1703 }
 0x244   :  { %v2275_v58 = vmul.f32 %v1704_v54, %v1702_v60 }
 0x246   :  { %v762_v3 = vpack.c.bf16 %v2275_v58, %v2275_v58 }
 0x248   :  { %796 = vmatmul.mubr.bf16.vlgmr.msra.gmra.mxu0 %v762_v3  ;;  %837 = vmatmul.mubr.bf16.vlgmr.msra.gmra.mxu1 %v762_v3 }
 0x249   :  { %881 = vmatpush1.bf16.msra.mxu0 %v1988_v9  ;;  %922 = vmatpush1.bf16.msra.mxu1 %v1991_v10 }
 0x24a   :  { %882 = vmatprep.subr.bf16.mxu0 %v1995_v11  ;;  %923 = vmatprep.subr.bf16.mxu1 %v1999_v12 }
 0x24b   :  { %912 = vmatprep.mubr.bf16.mxu0 %v2578_v46  ;;  %953 = vmatprep.mubr.bf16.mxu1 %v2578_v46 }
 0x24d   :  { %883 = vmatpush1.bf16.msra.mxu0 %v2001_v13  ;;  %924 = vmatpush1.bf16.msra.mxu1 %v2003_v14 }
 0x24e   :  { %884 = vmatprep.subr.bf16.mxu0 %v2009_v16  ;;  %925 = vmatprep.subr.bf16.mxu1 %v2012_v17 }
 0x251   :  { %885 = vmatpush1.bf16.msra.mxu0 %v2015_v18  ;;  %926 = vmatpush1.bf16.msra.mxu1 %v2017_v19 }
 0x252   :  { %886 = vmatprep.subr.bf16.mxu0 %v2021_v20  ;;  %927 = vmatprep.subr.bf16.mxu1 %v2024_v21 }
 0x255   :  { %887 = vmatpush1.bf16.msra.mxu0 %v2028_v22  ;;  %928 = vmatpush1.bf16.msra.mxu1 %v2031_v23 }
 0x256   :  { %888 = vmatprep.subr.bf16.mxu0 %v2036_v24  ;;  %929 = vmatprep.subr.bf16.mxu1 %v2040_v25 }
 0x259   :  { %889 = vmatpush1.bf16.msra.mxu0 %v2043_v27  ;;  %930 = vmatpush1.bf16.msra.mxu1 %v2047_v28 }
 0x25a   :  { %890 = vmatprep.subr.bf16.mxu0 %v2049_v29  ;;  %931 = vmatprep.subr.bf16.mxu1 %v2052_v30 }
 0x25d   :  { %891 = vmatpush1.bf16.msra.mxu0 %v2057_v31  ;;  %932 = vmatpush1.bf16.msra.mxu1 %v2059_v32 }
 0x25e   :  { %892 = vmatprep.subr.bf16.mxu0 %v2064_v33  ;;  %933 = vmatprep.subr.bf16.mxu1 %v2068_v34 }
 0x261   :  { %893 = vmatpush1.bf16.msra.mxu0 %v2071_v36  ;;  %934 = vmatpush1.bf16.msra.mxu1 %v2075_v37 }
 0x262   :  { %894 = vmatprep.subr.bf16.mxu0 %v2077_v38  ;;  %935 = vmatprep.subr.bf16.mxu1 %v2080_v39 }
 0x265   :  { %895 = vmatpush1.bf16.msra.mxu0 %v2085_v40  ;;  %936 = vmatpush1.bf16.msra.mxu1 %v2090_v41 }
 0x266   :  { %997 = vmatprep.subr.bf16.mxu0 %v1984_v7  ;;  %1038 = vmatprep.subr.bf16.mxu1 %v1986_v8 }
 0x308   :  { %v797_v56 = vpop.f32.mrf.mxu0  ;;  %v838_v47 = vpop.f32.mrf.mxu1 }
 0x309   :  { %v845_v57 = vadd.f32 %v797_v56, %v2160_v4  ;;  %v847_v49 = vadd.f32 %v838_v47, %v2579_v63 }
 0x30a   :  { %v799_v44 = vpop.f32.mrf.mxu0  ;;  %v840_v5 = vpop.f32.mrf.mxu1 }
 0x30b   :  { %v1581_v45 = vmul.f32 -1.442695, %v845_v57  ;;  %v846_v2 = vadd.f32 %v799_v44, %v2165_v26  ;;  %v848_v1 = vadd.f32 %v840_v5, %v2168_v35  ;;  %v756_v5 = vadd.f32 %v2275_v58, %v2229_v50  ;;  %v2580_v58 = vld [vmem:[#allocation15_spill] sm:$0xff] }
 0x30c   :  { %v801_v61 = vpop.f32.mrf.mxu0  ;;  %v842_v42 = vpop.f32.mrf.mxu1 }
 0x30d   :  { %1705 = vpow2.f32 %v1581_v45  ;;  %v1582_v53 = vmul.f32 -1.442695, %v846_v2  ;;  %v1583_v51 = vmul.f32 -1.442695, %v848_v1  ;;  %v2581_v1 = vld [vmem:[#allocation17_spill] sm:$0xff] }
 0x30e   :  { %v802_v55 = vpop.f32.mrf.mxu0  ;;  %v843_v59 = vpop.f32.mrf.mxu1 }
 0x30f   :  { %1707 = vpow2.f32 %v1582_v53 }
 0x310   :  { %1709 = vtanh.f32 %v847_v49 }
 0x311   :  { %1711 = vpow2.f32 %v1583_v51 }
 0x31a   :  { %v1706_v48 = vpop.eup %1705 }
 0x31b   :  { %v852_v62 = vadd.f32 1.0, %v1706_v48 }
 0x31c   :  { %v1708_v4 = vpop.eup %1707 }
 0x31d   :  { %1713 = vrcp.f32 %v852_v62  ;;  %v858_v52 = vadd.f32 1.0, %v1708_v4  ;;  %v1710_v26 = vpop.eup %1709 }
 0x31e   :  { %v1712_v43 = vpop.eup %1711 }
 0x31f   :  { %1715 = vrcp.f32 %v858_v52  ;;  %v865_v56 = vadd.f32 1.0, %v1712_v43  ;;  %v2582_v52 = vld [vmem:[#allocation18_spill] sm:$0xff] }
 0x321   :  { %1717 = vrcp.f32 %v865_v56 }
 0x32a   :  { %v1714_v60 = vpop.eup %1713 }
 0x32b   :  { %v869_v54 = vmul.f32 %v1714_v60, %v1710_v26  ;;  %v2583_v26 = vld [vmem:[#allocation16_spill] sm:$0xff] }
 0x32c   :  { %v1716_v3 = vpop.eup %1715 }
 0x32d   :  { %v868_v57 = vmul.f32 %v1716_v3, %v2272_v0 }
 0x32e   :  { %v1718_v47 = vpop.eup %1717 }
 0x32f   :  { %v2318_v35 = vadd.f32 %v869_v54, %v868_v57 }
 0x331   :  { %1719 = vtanh.f32 %v2318_v35 }
 0x33e   :  { %v1720_v44 = vpop.eup %1719 }
 0x33f   :  { %v872_v45 = vmul.f32 %v1720_v44, %v1718_v47 }
 0x341   :  { %v2323_v2 = vadd.f32 %v872_v45, %v756_v5  ;;  %v879_v61 = vpack.c.bf16 %v872_v45, %v872_v45 }
 0x343   :  { %913 = vmatmul.mubr.bf16.vlgmr.msra.gmra.mxu0 %v879_v61  ;;  %954 = vmatmul.mubr.bf16.vlgmr.msra.gmra.mxu1 %v879_v61 }
 0x344   :  { %998 = vmatpush1.bf16.msra.mxu0 %v1988_v9  ;;  %1039 = vmatpush1.bf16.msra.mxu1 %v1991_v10 }
 0x345   :  { %999 = vmatprep.subr.bf16.mxu0 %v1995_v11  ;;  %1040 = vmatprep.subr.bf16.mxu1 %v1999_v12 }
 0x346   :  { %1029 = vmatprep.mubr.bf16.mxu0 %v2578_v46  ;;  %1070 = vmatprep.mubr.bf16.mxu1 %v2578_v46 }
 0x348   :  { %1000 = vmatpush1.bf16.msra.mxu0 %v2001_v13  ;;  %1041 = vmatpush1.bf16.msra.mxu1 %v2003_v14 }
 0x349   :  { %1001 = vmatprep.subr.bf16.mxu0 %v2009_v16  ;;  %1042 = vmatprep.subr.bf16.mxu1 %v2012_v17 }
 0x34c   :  { %1002 = vmatpush1.bf16.msra.mxu0 %v2015_v18  ;;  %1043 = vmatpush1.bf16.msra.mxu1 %v2017_v19 }
 0x34d   :  { %1003 = vmatprep.subr.bf16.mxu0 %v2021_v20  ;;  %1044 = vmatprep.subr.bf16.mxu1 %v2024_v21 }
 0x350   :  { %1004 = vmatpush1.bf16.msra.mxu0 %v2028_v22  ;;  %1045 = vmatpush1.bf16.msra.mxu1 %v2031_v23 }
 0x351   :  { %1005 = vmatprep.subr.bf16.mxu0 %v2036_v24  ;;  %1046 = vmatprep.subr.bf16.mxu1 %v2040_v25 }
 0x354   :  { %1006 = vmatpush1.bf16.msra.mxu0 %v2043_v27  ;;  %1047 = vmatpush1.bf16.msra.mxu1 %v2047_v28 }
 0x355   :  { %1007 = vmatprep.subr.bf16.mxu0 %v2049_v29  ;;  %1048 = vmatprep.subr.bf16.mxu1 %v2052_v30 }
 0x358   :  { %1008 = vmatpush1.bf16.msra.mxu0 %v2057_v31  ;;  %1049 = vmatpush1.bf16.msra.mxu1 %v2059_v32 }
 0x359   :  { %1009 = vmatprep.subr.bf16.mxu0 %v2064_v33  ;;  %1050 = vmatprep.subr.bf16.mxu1 %v2068_v34 }
 0x35c   :  { %1010 = vmatpush1.bf16.msra.mxu0 %v2071_v36  ;;  %1051 = vmatpush1.bf16.msra.mxu1 %v2075_v37 }
 0x35d   :  { %1011 = vmatprep.subr.bf16.mxu0 %v2077_v38  ;;  %1052 = vmatprep.subr.bf16.mxu1 %v2080_v39 }
 0x360   :  { %1012 = vmatpush1.bf16.msra.mxu0 %v2085_v40  ;;  %1053 = vmatpush1.bf16.msra.mxu1 %v2090_v41 }
 0x361   :  { %1114 = vmatprep.subr.bf16.mxu0 %v1984_v7  ;;  %1155 = vmatprep.subr.bf16.mxu1 %v1986_v8 }
 0x403   :  { %v914_v50 = vpop.f32.mrf.mxu0  ;;  %v955_v0 = vpop.f32.mrf.mxu1 }
 0x404   :  { %v962_v42 = vadd.f32 %v914_v50, %v2580_v58  ;;  %v964_v8 = vadd.f32 %v955_v0, %v2583_v26 }
 0x405   :  { %v916_v53 = vpop.f32.mrf.mxu0  ;;  %v957_v55 = vpop.f32.mrf.mxu1 }
 0x406   :  { %v1584_v59 = vmul.f32 -1.442695, %v962_v42  ;;  %v963_v63 = vadd.f32 %v916_v53, %v2581_v1  ;;  %v965_v7 = vadd.f32 %v957_v55, %v2582_v52 }
 0x407   :  { %v918_v49 = vpop.f32.mrf.mxu0  ;;  %v959_v51 = vpop.f32.mrf.mxu1 }
 0x408   :  { %1721 = vpow2.f32 %v1584_v59  ;;  %v1585_v48 = vmul.f32 -1.442695, %v963_v63  ;;  %v1586_v43 = vmul.f32 -1.442695, %v965_v7 }
 0x409   :  { %v919_v62 = vpop.f32.mrf.mxu0  ;;  %v960_v4 = vpop.f32.mrf.mxu1 }
 0x40a   :  { %1723 = vpow2.f32 %v1585_v48 }
 0x40b   :  { %1725 = vtanh.f32 %v964_v8 }
 0x40c   :  { %1727 = vpow2.f32 %v1586_v43 }
 0x415   :  { %v1722_v60 = vpop.eup %1721 }
 0x416   :  { %v969_v54 = vadd.f32 1.0, %v1722_v60 }
 0x417   :  { %v1724_v3 = vpop.eup %1723 }
 0x418   :  { %1729 = vrcp.f32 %v969_v54  ;;  %v975_v56 = vadd.f32 1.0, %v1724_v3  ;;  %v1726_v57 = vpop.eup %1725  ;;  %v2419_v3 = vld [vmem:[#allocation9 + $0xe0] ss:$16 sps:$4 sm:$0xff]  }
 0x419   :  { %v1728_v47 = vpop.eup %1727 }
 0x41a   :  { %1731 = vrcp.f32 %v975_v56  ;;  %v982_v61 = vadd.f32 1.0, %v1728_v47  ;;  %v2422_v56 = vld [vmem:[#allocation9 + $0xe8] ss:$16 sps:$4 sm:$0xff]   ;;  %v2428_v47 = vld [vmem:[#allocation9 + $0xcc] ss:$16 sps:$4 sm:$0xff]  }
 0x41c   :  { %1733 = vrcp.f32 %v982_v61  ;;  %v2442_v61 = vld [vmem:[#allocation9 + $0xac] ss:$16 sps:$4 sm:$0xff]  }
 0x425   :  { %v1730_v44 = vpop.eup %1729 }
 0x426   :  { %v986_v5 = vmul.f32 %v1730_v44, %v1726_v57  ;;  %v2425_v57 = vld [vmem:[#allocation9 + $0xc4] ss:$16 sps:$4 sm:$0xff]   ;;  %v2433_v44 = vld [vmem:[#allocation9 + $0xc0] ss:$16 sps:$4 sm:$0xff]  }
 0x427   :  { %v1732_v45 = vpop.eup %1731 }
 0x428   :  { %v985_v50 = vmul.f32 %v1732_v45, %v2318_v35  ;;  %v2439_v45 = vld [vmem:[#allocation9 + $0xa4] ss:$16 sps:$4 sm:$0xff]  }
 0x429   :  { %v1734_v0 = vpop.eup %1733 }
 0x42a   :  { %v2364_v58 = vadd.f32 %v986_v5, %v985_v50  ;;  %v2436_v5 = vld [vmem:[#allocation9 + $0xc8] ss:$16 sps:$4 sm:$0xff]   ;;  %v2445_v50 = vld [vmem:[#allocation9 + $0xa0] ss:$16 sps:$4 sm:$0xff]  }
 0x42c   :  { %1735 = vtanh.f32 %v2364_v58 }
 0x439   :  { %v1736_v42 = vpop.eup %1735 }
 0x43a   :  { %v989_v53 = vmul.f32 %v1736_v42, %v1734_v0  ;;  %v2451_v0 = vld [vmem:[#allocation9 + $0x84] ss:$16 sps:$4 sm:$0xff]   ;;  %v2454_v42 = vld [vmem:[#allocation9 + $0x8c] ss:$16 sps:$4 sm:$0xff]  }
 0x43c   :  { %v996_v55 = vpack.c.bf16 %v989_v53, %v989_v53  ;;  %v2368_v59 = vadd.f32 %v989_v53, %v2323_v2  ;;  %v2457_v53 = vld [vmem:[#allocation9 + $0x80] ss:$16 sps:$4 sm:$0xff]  }
 0x43e   :  { %1030 = vmatmul.mubr.bf16.vlgmr.msra.gmra.mxu0 %v996_v55  ;;  %1071 = vmatmul.mubr.bf16.vlgmr.msra.gmra.mxu1 %v996_v55  ;;  %v2460_v55 = vld [vmem:[#allocation9 + $0x88] ss:$16 sps:$4 sm:$0xff]  }
 0x43f   :  { %1115 = vmatpush1.bf16.msra.mxu0 %v1988_v9  ;;  %1156 = vmatpush1.bf16.msra.mxu1 %v1991_v10  ;;  %v2402_v9 = vld [vmem:[#allocation9 + $0xe4] ss:$16 sps:$4 sm:$0xff]   ;;  %v2405_v10 = vld [vmem:[#allocation9 + $0xec] ss:$16 sps:$4 sm:$0xff]  }
 0x440   :  { %1116 = vmatprep.subr.bf16.mxu0 %v1995_v11  ;;  %1157 = vmatprep.subr.bf16.mxu1 %v1999_v12 }
 0x441   :  { %1146 = vmatprep.mubr.bf16.mxu0 %v2578_v46  ;;  %1187 = vmatprep.mubr.bf16.mxu1 %v2578_v46 }
 0x443   :  { %1117 = vmatpush1.bf16.msra.mxu0 %v2001_v13  ;;  %1158 = vmatpush1.bf16.msra.mxu1 %v2003_v14  ;;  %v2584_v13 = vld [vmem:[#allocation19_spill] sm:$0xff] }
 0x444   :  { %1118 = vmatprep.subr.bf16.mxu0 %v2009_v16  ;;  %1159 = vmatprep.subr.bf16.mxu1 %v2012_v17 }
 0x447   :  { %1119 = vmatpush1.bf16.msra.mxu0 %v2015_v18  ;;  %1160 = vmatpush1.bf16.msra.mxu1 %v2017_v19  ;;  %v2585_v19 = vld [vmem:[#allocation21_spill] sm:$0xff] }
 0x448   :  { %1120 = vmatprep.subr.bf16.mxu0 %v2021_v20  ;;  %1161 = vmatprep.subr.bf16.mxu1 %v2024_v21 }
 0x44b   :  { %1121 = vmatpush1.bf16.msra.mxu0 %v2028_v22  ;;  %1162 = vmatpush1.bf16.msra.mxu1 %v2031_v23 }
 0x44c   :  { %1122 = vmatprep.subr.bf16.mxu0 %v2036_v24  ;;  %1163 = vmatprep.subr.bf16.mxu1 %v2040_v25 }
 0x44f   :  { %1123 = vmatpush1.bf16.msra.mxu0 %v2043_v27  ;;  %1164 = vmatpush1.bf16.msra.mxu1 %v2047_v28  ;;  %v2586_v27 = vld [vmem:[#allocation22_spill] sm:$0xff] }
 0x450   :  { %1124 = vmatprep.subr.bf16.mxu0 %v2049_v29  ;;  %1165 = vmatprep.subr.bf16.mxu1 %v2052_v30  ;;  %v2587_v29 = vld [vmem:[#allocation20_spill] sm:$0xff] }
 0x453   :  { %1125 = vmatpush1.bf16.msra.mxu0 %v2057_v31  ;;  %1166 = vmatpush1.bf16.msra.mxu1 %v2059_v32 }
 0x454   :  { %1126 = vmatprep.subr.bf16.mxu0 %v2064_v33  ;;  %1167 = vmatprep.subr.bf16.mxu1 %v2068_v34 }
 0x457   :  { %1127 = vmatpush1.bf16.msra.mxu0 %v2071_v36  ;;  %1168 = vmatpush1.bf16.msra.mxu1 %v2075_v37 }
 0x458   :  { %1128 = vmatprep.subr.bf16.mxu0 %v2077_v38  ;;  %1169 = vmatprep.subr.bf16.mxu1 %v2080_v39 }
 0x45b   :  { %1129 = vmatpush1.bf16.msra.mxu0 %v2085_v40  ;;  %1170 = vmatpush1.bf16.msra.mxu1 %v2090_v41 }
 0x45c   :  { %1231 = vmatprep.subr.bf16.mxu0 %v2402_v9  ;;  %1272 = vmatprep.subr.bf16.mxu1 %v2405_v10 }
 0x4fe   :  { %v1031_v11 = vpop.f32.mrf.mxu0  ;;  %v1072_v12 = vpop.f32.mrf.mxu1 }
 0x4ff   :  { %v1079_v14 = vadd.f32 %v1031_v11, %v2584_v13  ;;  %v1081_v30 = vadd.f32 %v1072_v12, %v2587_v29  ;;  %v2466_v11 = vld [vmem:[#allocation9 + $0x6c] ss:$16 sps:$4 sm:$0xff]   ;;  %v2469_v12 = vld [vmem:[#allocation9 + $0x60] ss:$16 sps:$4 sm:$0xff]   ;;  %v2472_v13 = vld [vmem:[#allocation9 + $0x68] ss:$16 sps:$4 sm:$0xff]  }
 0x500   :  { %v1033_v16 = vpop.f32.mrf.mxu0  ;;  %v1074_v17 = vpop.f32.mrf.mxu1 }
 0x501   :  { %v1587_v18 = vmul.f32 -1.442695, %v1079_v14  ;;  %v1080_v20 = vadd.f32 %v1033_v16, %v2585_v19  ;;  %v1082_v28 = vadd.f32 %v1074_v17, %v2586_v27  ;;  %v2475_v14 = vld [vmem:[#allocation9 + $0x44] ss:$16 sps:$4 sm:$0xff]   ;;  %v2478_v16 = vld [vmem:[#allocation9 + $0x4c] ss:$16 sps:$4 sm:$0xff]  }
 0x502   :  { %v1035_v21 = vpop.f32.mrf.mxu0  ;;  %v1076_v22 = vpop.f32.mrf.mxu1  ;;  %v2481_v17 = vld [vmem:[#allocation9 + $0x40] ss:$16 sps:$4 sm:$0xff]   ;;  %v2591_v27 = vld [vmem:[#allocation24_spill] sm:$0xff] }
 0x503   :  { %1737 = vpow2.f32 %v1587_v18  ;;  %v1588_v23 = vmul.f32 -1.442695, %v1080_v20  ;;  %v1589_v31 = vmul.f32 -1.442695, %v1082_v28  ;;  %v2484_v18 = vld [vmem:[#allocation9 + $0x48] ss:$16 sps:$4 sm:$0xff]  }
 0x504   :  { %v1036_v24 = vpop.f32.mrf.mxu0  ;;  %v1077_v25 = vpop.f32.mrf.mxu1  ;;  %v2588_v20 = vld [vmem:[#allocation23_spill] sm:$0xff] }
 0x505   :  { %1739 = vpow2.f32 %v1588_v23 }
 0x506   :  { %1741 = vtanh.f32 %v1081_v30 }
 0x507   :  { %1743 = vpow2.f32 %v1589_v31 }
 0x510   :  { %v1738_v32 = vpop.eup %1737 }
 0x511   :  { %v1086_v35 = vadd.f32 1.0, %v1738_v32 }
 0x512   :  { %v1740_v2 = vpop.eup %1739 }
 0x513   :  { %1745 = vrcp.f32 %v1086_v35  ;;  %v1092_v1 = vadd.f32 1.0, %v1740_v2  ;;  %v1742_v63 = vpop.eup %1741 }
 0x514   :  { %v1744_v49 = vpop.eup %1743 }
 0x515   :  { %1747 = vrcp.f32 %v1092_v1  ;;  %v1099_v4 = vadd.f32 1.0, %v1744_v49 }
 0x517   :  { %1749 = vrcp.f32 %v1099_v4 }
 0x520   :  { %v1746_v51 = vpop.eup %1745 }
 0x521   :  { %v1103_v48 = vmul.f32 %v1746_v51, %v1742_v63 }
 0x522   :  { %v1748_v62 = vpop.eup %1747 }
 0x523   :  { %v1102_v52 = vmul.f32 %v1748_v62, %v2364_v58  ;;  %v2448_v58 = vld [vmem:[#allocation9 + $0xa8] ss:$16 sps:$4 sm:$0xff]  }
 0x524   :  { %v1750_v26 = vpop.eup %1749 }
 0x525   :  { %v2413_v7 = vadd.f32 %v1103_v48, %v1102_v52 }
 0x527   :  { %1751 = vtanh.f32 %v2413_v7 }
 0x534   :  { %v1752_v8 = vpop.eup %1751 }
 0x535   :  { %v1106_v43 = vmul.f32 %v1752_v8, %v1750_v26 }
 0x537   :  { %v1113_v60 = vpack.c.bf16 %v1106_v43, %v1106_v43  ;;  %v2417_v54 = vadd.f32 %v1106_v43, %v2368_v59  ;;  %v2463_v59 = vld [vmem:[#allocation9 + $0x64] ss:$16 sps:$4 sm:$0xff]  }
 0x539   :  { %1147 = vmatmul.mubr.bf16.vlgmr.msra.gmra.mxu0 %v1113_v60  ;;  %1188 = vmatmul.mubr.bf16.vlgmr.msra.gmra.mxu1 %v1113_v60  ;;  %v1831_v60 = vld [vmem:[#allocation9 + $0x20] ss:$16 sps:$4 sm:$0xff]  }
 0x53a   :  { %1232 = vmatpush1.bf16.msra.mxu0 %v2419_v3  ;;  %1273 = vmatpush1.bf16.msra.mxu1 %v2422_v56 }
 0x53b   :  { %1233 = vmatprep.subr.bf16.mxu0 %v2425_v57  ;;  %1274 = vmatprep.subr.bf16.mxu1 %v2428_v47 }
 0x53c   :  { %1263 = vmatprep.mubr.bf16.mxu0 %v2578_v46  ;;  %1304 = vmatprep.mubr.bf16.mxu1 %v2578_v46 }
 0x53e   :  { %1234 = vmatpush1.bf16.msra.mxu0 %v2433_v44  ;;  %1275 = vmatpush1.bf16.msra.mxu1 %v2436_v5 }
 0x53f   :  { %1235 = vmatprep.subr.bf16.mxu0 %v2439_v45  ;;  %1276 = vmatprep.subr.bf16.mxu1 %v2442_v61 }
 0x542   :  { %1236 = vmatpush1.bf16.msra.mxu0 %v2445_v50  ;;  %1277 = vmatpush1.bf16.msra.mxu1 %v2448_v58 }
 0x543   :  { %1237 = vmatprep.subr.bf16.mxu0 %v2451_v0  ;;  %1278 = vmatprep.subr.bf16.mxu1 %v2454_v42 }
 0x546   :  { %1238 = vmatpush1.bf16.msra.mxu0 %v2457_v53  ;;  %1279 = vmatpush1.bf16.msra.mxu1 %v2460_v55 }
 0x547   :  { %1239 = vmatprep.subr.bf16.mxu0 %v2463_v59  ;;  %1280 = vmatprep.subr.bf16.mxu1 %v2466_v11 }
 0x54a   :  { %1240 = vmatpush1.bf16.msra.mxu0 %v2469_v12  ;;  %1281 = vmatpush1.bf16.msra.mxu1 %v2472_v13 }
 0x54b   :  { %1241 = vmatprep.subr.bf16.mxu0 %v2475_v14  ;;  %1282 = vmatprep.subr.bf16.mxu1 %v2478_v16 }
 0x54e   :  { %1242 = vmatpush1.bf16.msra.mxu0 %v2481_v17  ;;  %1283 = vmatpush1.bf16.msra.mxu1 %v2484_v18 }
 0x54f   :  { %1243 = vmatprep.subr.bf16.mxu0 %v2064_v33  ;;  %1284 = vmatprep.subr.bf16.mxu1 %v2068_v34 }
 0x552   :  { %1244 = vmatpush1.bf16.msra.mxu0 %v2071_v36  ;;  %1285 = vmatpush1.bf16.msra.mxu1 %v2075_v37  ;;  %v2589_v37 = vld [vmem:[#allocation25_spill] sm:$0xff] }
 0x553   :  { %1245 = vmatprep.subr.bf16.mxu0 %v2077_v38  ;;  %1286 = vmatprep.subr.bf16.mxu1 %v2080_v39 }
 0x556   :  { %1246 = vmatpush1.bf16.msra.mxu0 %v2085_v40  ;;  %1287 = vmatpush1.bf16.msra.mxu1 %v2090_v41  ;;  %v2590_v41 = vld [vmem:[#allocation26_spill] sm:$0xff] }
 0x557   :  { %1348 = vmatprep.subr.bf16.mxu0 %v2402_v9  ;;  %1389 = vmatprep.subr.bf16.mxu1 %v2405_v10 }
 0x5f9   :  { %v1148_v19 = vpop.f32.mrf.mxu0  ;;  %v1189_v33 = vpop.f32.mrf.mxu1 }
 0x5fa   :  { %v1196_v34 = vadd.f32 %v1148_v19, %v2588_v20  ;;  %v1198_v10 = vadd.f32 %v1189_v33, %v2591_v27 }
 0x5fb   :  { %v1150_v21 = vpop.f32.mrf.mxu0  ;;  %v1191_v36 = vpop.f32.mrf.mxu1 }
 0x5fc   :  { %v1590_v22 = vmul.f32 -1.442695, %v1196_v34  ;;  %v1197_v23 = vadd.f32 %v1150_v21, %v2589_v37  ;;  %v1199_v9 = vadd.f32 %v1191_v36, %v2590_v41 }
 0x5fd   :  { %v1152_v38 = vpop.f32.mrf.mxu0  ;;  %v1193_v24 = vpop.f32.mrf.mxu1 }
 0x5fe   :  { %1753 = vpow2.f32 %v1590_v22  ;;  %v1591_v39 = vmul.f32 -1.442695, %v1197_v23  ;;  %v1592_v28 = vmul.f32 -1.442695, %v1199_v9 }
 0x5ff   :  { %v1153_v40 = vpop.f32.mrf.mxu0  ;;  %v1194_v25 = vpop.f32.mrf.mxu1 }
 0x600   :  { %1755 = vpow2.f32 %v1591_v39 }
 0x601   :  { %1757 = vtanh.f32 %v1198_v10 }
 0x602   :  { %1759 = vpow2.f32 %v1592_v28 }
 0x60b   :  { %v1754_v29 = vpop.eup %1753 }
 0x60c   :  { %v1203_v30 = vadd.f32 1.0, %v1754_v29 }
 0x60d   :  { %v1756_v31 = vpop.eup %1755 }
 0x60e   :  { %1761 = vrcp.f32 %v1203_v30  ;;  %v1209_v32 = vadd.f32 1.0, %v1756_v31  ;;  %v1758_v35 = vpop.eup %1757  ;;  %v2596_v30 = vld [vmem:[#allocation31_spill] sm:$0xff] }
 0x60f   :  { %v1760_v2 = vpop.eup %1759 }
 0x610   :  { %1763 = vrcp.f32 %v1209_v32  ;;  %v1216_v51 = vadd.f32 1.0, %v1760_v2 }
 0x612   :  { %1765 = vrcp.f32 %v1216_v51 }
 0x61b   :  { %v1762_v1 = vpop.eup %1761 }
 0x61c   :  { %v1220_v63 = vmul.f32 %v1762_v1, %v1758_v35 }
 0x61d   :  { %v1764_v49 = vpop.eup %1763 }
 0x61e   :  { %v1219_v48 = vmul.f32 %v1764_v49, %v2413_v7  ;;  %v1830_v7 = vld [vmem:[#allocation9 + $0x2c] ss:$16 sps:$4 sm:$0xff]  }
 0x61f   :  { %v1766_v4 = vpop.eup %1765 }
 0x620   :  { %v2502_v62 = vadd.f32 %v1220_v63, %v1219_v48 }
 0x622   :  { %1767 = vtanh.f32 %v2502_v62 }
 0x62f   :  { %v1768_v52 = vpop.eup %1767 }
 0x630   :  { %v1223_v26 = vmul.f32 %v1768_v52, %v1766_v4  ;;  %v2597_v52 = vld [vmem:[#allocation32_spill] sm:$0xff] }
 0x632   :  { %v1230_v8 = vpack.c.bf16 %v1223_v26, %v1223_v26  ;;  %v2506_v43 = vadd.f32 %v1223_v26, %v2417_v54  ;;  %v1832_v54 = vld [vmem:[#allocation9 + $0x28] ss:$16 sps:$4 sm:$0xff]  }
 0x634   :  { %1264 = vmatmul.mubr.bf16.vlgmr.msra.gmra.mxu0 %v1230_v8  ;;  %1305 = vmatmul.mubr.bf16.vlgmr.msra.gmra.mxu1 %v1230_v8 }
 0x635   :  { %1349 = vmatpush1.bf16.msra.mxu0 %v2419_v3  ;;  %1390 = vmatpush1.bf16.msra.mxu1 %v2422_v56  ;;  %v1833_v3 = vld [vmem:[#allocation9 + $0x4] ss:$16 sps:$4 sm:$0xff]   ;;  %v1834_v56 = vld [vmem:[#allocation9 + $0xc] ss:$16 sps:$4 sm:$0xff]  }
 0x636   :  { %1350 = vmatprep.subr.bf16.mxu0 %v2425_v57  ;;  %1391 = vmatprep.subr.bf16.mxu1 %v2428_v47  ;;  %v1835_v57 = vld [vmem:[#allocation9] ss:$16 sps:$4 sm:$0xff]   ;;  %v1836_v47 = vld [vmem:[#allocation9 + $0x8] ss:$16 sps:$4 sm:$0xff]  }
 0x637   :  { %1380 = vmatprep.mubr.bf16.mxu0 %v2578_v46  ;;  %1421 = vmatprep.mubr.bf16.mxu1 %v2578_v46  ;;  %v1829_v46 = vld [vmem:[#allocation9 + $0x24] ss:$16 sps:$4 sm:$0xff]  }
 0x639   :  { %1351 = vmatpush1.bf16.msra.mxu0 %v2433_v44  ;;  %1392 = vmatpush1.bf16.msra.mxu1 %v2436_v5 }
 0x63a   :  { %1352 = vmatprep.subr.bf16.mxu0 %v2439_v45  ;;  %1393 = vmatprep.subr.bf16.mxu1 %v2442_v61  ;;  %v2592_v45 = vld [vmem:[#allocation27_spill] sm:$0xff] }
 0x63d   :  { %1353 = vmatpush1.bf16.msra.mxu0 %v2445_v50  ;;  %1394 = vmatpush1.bf16.msra.mxu1 %v2448_v58 }
 0x63e   :  { %1354 = vmatprep.subr.bf16.mxu0 %v2451_v0  ;;  %1395 = vmatprep.subr.bf16.mxu1 %v2454_v42  ;;  %v2593_v42 = vld [vmem:[#allocation29_spill] sm:$0xff] }
 0x641   :  { %1355 = vmatpush1.bf16.msra.mxu0 %v2457_v53  ;;  %1396 = vmatpush1.bf16.msra.mxu1 %v2460_v55 }
 0x642   :  { %1356 = vmatprep.subr.bf16.mxu0 %v2463_v59  ;;  %1397 = vmatprep.subr.bf16.mxu1 %v2466_v11 }
 0x645   :  { %1357 = vmatpush1.bf16.msra.mxu0 %v2469_v12  ;;  %1398 = vmatpush1.bf16.msra.mxu1 %v2472_v13 }
 0x646   :  { %1358 = vmatprep.subr.bf16.mxu0 %v2475_v14  ;;  %1399 = vmatprep.subr.bf16.mxu1 %v2478_v16  ;;  %v2594_v14 = vld [vmem:[#allocation30_spill] sm:$0xff] }
 0x649   :  { %1359 = vmatpush1.bf16.msra.mxu0 %v2481_v17  ;;  %1400 = vmatpush1.bf16.msra.mxu1 %v2484_v18  ;;  %v2595_v17 = vld [vmem:[#allocation28_spill] sm:$0xff] }
 0x64a   :  { %1360 = vmatprep.subr.bf16.mxu0 %v1829_v46  ;;  %1401 = vmatprep.subr.bf16.mxu1 %v1830_v7 }
 0x64d   :  { %1361 = vmatpush1.bf16.msra.mxu0 %v1831_v60  ;;  %1402 = vmatpush1.bf16.msra.mxu1 %v1832_v54 }
 0x64e   :  { %1362 = vmatprep.subr.bf16.mxu0 %v1833_v3  ;;  %1403 = vmatprep.subr.bf16.mxu1 %v1834_v56 }
 0x651   :  { %1363 = vmatpush1.bf16.msra.mxu0 %v1835_v57  ;;  %1404 = vmatpush1.bf16.msra.mxu1 %v1836_v47 }
 0x6f4   :  { %v1265_v44 = vpop.f32.mrf.mxu0  ;;  %v1306_v5 = vpop.f32.mrf.mxu1 }
 0x6f5   :  { %v1313_v61 = vadd.f32 %v1265_v44, %v2592_v45  ;;  %v1315_v18 = vadd.f32 %v1306_v5, %v2595_v17 }
 0x6f6   :  { %v1267_v50 = vpop.f32.mrf.mxu0  ;;  %v1308_v58 = vpop.f32.mrf.mxu1 }
 0x6f7   :  { %v1593_v0 = vmul.f32 -1.442695, %v1313_v61  ;;  %v1314_v53 = vadd.f32 %v1267_v50, %v2593_v42  ;;  %v1316_v16 = vadd.f32 %v1308_v58, %v2594_v14  ;;  %v1599_v58 = vld [vmem:[%s2553_s4] ss:$0 sm:$0xff]  ;;  %s1932_s4 = smov [#allocation10]  }
 0x6f8   :  { %v1269_v55 = vpop.f32.mrf.mxu0  ;;  %v1310_v59 = vpop.f32.mrf.mxu1  ;;  %s1517_s17 = sshll.u32 %s1932_s4, 4  ;;  %s1518_s17 = int_to_ptr.vmem [resolvable:$true] %s1517_s17 }
 0x6f9   :  { %1769 = vpow2.f32 %v1593_v0  ;;  %v1594_v11 = vmul.f32 -1.442695, %v1314_v53  ;;  %v1595_v19 = vmul.f32 -1.442695, %v1316_v16  ;;  %v1600_v53 = vld [vmem:[#allocation3] ss:$0 sm:$0xff]  ;;  %p1902_p2 = scmp.lt.s32.totalorder %s1518_s17, %s1518_s17 }
 0x6fa   :  { %v1270_v12 = vpop.f32.mrf.mxu0  ;;  %v1311_v13 = vpop.f32.mrf.mxu1  ;;  %v1931_v16 = vmov 0.0   ;;  %s1897_s18 = scalar_lea.vmem %s1518_s17, 128 }
 0x6fb   :  { %1771 = vpow2.f32 %v1594_v11  ;;  %p1898_p1 = scmp.ne.s32.totalorder %s1518_s17, %s1897_s18  ;;  %p1903_p3 = scmp.lt.s32.totalorder %s1897_s18, %s1897_s18 }
 0x6fc   :  { %1773 = vtanh.f32 %v1315_v18  ;;  %v2598_v18 = vlaneseq }
 0x6fd   :  { %1775 = vpow2.f32 %v1595_v19  ;;  %p1904_p4 = por %p1903_p3, %p1902_p2 }
 0x6fe   :  { %v1488_v19 = vand.u32 127, %v2598_v18 }
 0x6ff   :  { %p1905_p5 = pnand %p1904_p4, %p1898_p1 }
 0x700   :  { %vm1491_vm2 = vcmp.eq.s32.totalorder %v1488_v19, 2  ;;  %vm1490_vm3 = vcmp.eq.s32.totalorder %v1488_v19, 1  ;;  %vm1489_vm4 = vcmp.eq.s32.totalorder %v1488_v19, 0 }
 0x706   :  { %v1770_v33 = vpop.eup %1769 }
 0x707   :  { %v1320_v20 = vadd.f32 1.0, %v1770_v33 }
 0x708   :  { %v1772_v34 = vpop.eup %1771 }
 0x709   :  { %1777 = vrcp.f32 %v1320_v20  ;;  %v1326_v21 = vadd.f32 1.0, %v1772_v34  ;;  %v1774_v36 = vpop.eup %1773 }
 0x70a   :  { %v1776_v22 = vpop.eup %1775 }
 0x70b   :  { %1779 = vrcp.f32 %v1326_v21  ;;  %v1333_v24 = vadd.f32 1.0, %v1776_v22 }
 0x70d   :  { %1781 = vrcp.f32 %v1333_v24 }
 0x716   :  { %v1778_v37 = vpop.eup %1777 }
 0x717   :  { %v1337_v23 = vmul.f32 %v1778_v37, %v1774_v36 }
 0x718   :  { %v1780_v38 = vpop.eup %1779 }
 0x719   :  { %v1336_v39 = vmul.f32 %v1780_v38, %v2502_v62 }
 0x71a   :  { %v1782_v25 = vpop.eup %1781 }
 0x71b   :  { %v1338_v40 = vadd.f32 %v1337_v23, %v1336_v39 }
 0x71d   :  { %1783 = vtanh.f32 %v1338_v40 }
 0x72a   :  { %v1784_v41 = vpop.eup %1783 }
 0x72b   :  { %v1340_v9 = vmul.f32 %v1784_v41, %v1782_v25 }
 0x72d   :  { %v1347_v27 = vpack.c.bf16 %v1340_v9, %v1340_v9  ;;  %v1341_v10 = vadd.f32 %v1340_v9, %v2506_v43 }
 0x72f   :  { %1381 = vmatmul.mubr.bf16.vlgmr.msra.gmra.mxu0 %v1347_v27  ;;  %1422 = vmatmul.mubr.bf16.vlgmr.msra.gmra.mxu1 %v1347_v27 }
 0x7ef   :  { %v1382_v28 = vpop.f32.mrf.mxu0  ;;  %v1423_v29 = vpop.f32.mrf.mxu1 }
 0x7f0   :  { %v1430_v31 = vadd.f32 %v1382_v28, %v2596_v30  ;;  %v1432_v26 = vadd.f32 %v1423_v29, %v2597_v52 }
 0x7f1   :  { %v1384_v32 = vpop.f32.mrf.mxu0  ;;  %v1425_v35 = vpop.f32.mrf.mxu1 }
 0x7f2   :  { %v1596_v2 = vmul.f32 -1.442695, %v1430_v31  ;;  %v1431_v1 = vadd.f32 %v1384_v32, %v2216_v6  ;;  %v1433_v4 = vadd.f32 %v1425_v35, %v2219_v15 }
 0x7f3   :  { %v1386_v63 = vpop.f32.mrf.mxu0  ;;  %v1427_v49 = vpop.f32.mrf.mxu1 }
 0x7f4   :  { %1785 = vpow2.f32 %v1596_v2  ;;  %v1597_v51 = vmul.f32 -1.442695, %v1431_v1  ;;  %v1598_v8 = vmul.f32 -1.442695, %v1433_v4 }
 0x7f5   :  { %v1387_v48 = vpop.f32.mrf.mxu0  ;;  %v1428_v62 = vpop.f32.mrf.mxu1 }
 0x7f6   :  { %1787 = vpow2.f32 %v1597_v51 }
 0x7f7   :  { %1789 = vtanh.f32 %v1432_v26 }
 0x7f8   :  { %1791 = vpow2.f32 %v1598_v8 }
 0x801   :  { %v1786_v43 = vpop.eup %1785 }
 0x802   :  { %v1437_v46 = vadd.f32 1.0, %v1786_v43 }
 0x803   :  { %v1788_v7 = vpop.eup %1787 }
 0x804   :  { %1793 = vrcp.f32 %v1437_v46  ;;  %v1443_v60 = vadd.f32 1.0, %v1788_v7  ;;  %v1790_v6 = vpop.eup %1789 }
 0x805   :  { %v1792_v54 = vpop.eup %1791 }
 0x806   :  { %1795 = vrcp.f32 %v1443_v60  ;;  %v1450_v47 = vadd.f32 1.0, %v1792_v54 }
 0x808   :  { %1797 = vrcp.f32 %v1450_v47 }
 0x811   :  { %v1794_v3 = vpop.eup %1793 }
 0x812   :  { %v1454_v56 = vmul.f32 %v1794_v3, %v1790_v6 }
 0x813   :  { %v1796_v57 = vpop.eup %1795 }
 0x814   :  { %v1453_v44 = vmul.f32 %v1796_v57, %v1338_v40 }
 0x815   :  { %v1798_v15 = vpop.eup %1797 }
 0x816   :  { %v1455_v5 = vadd.f32 %v1454_v56, %v1453_v44 }
 0x818   :  { %1799 = vtanh.f32 %v1455_v5 }
 0x825   :  { %v1800_v45 = vpop.eup %1799 }
 0x826   :  { %v1457_v61 = vmul.f32 %v1800_v45, %v1798_v15 }
 0x828   :  { %v1458_v50 = vadd.f32 %v1457_v61, %v1341_v10 }
 0x82a   :  { %v1459_v0 = vmul.f32 0.125, %v1458_v50 }
 0x82c   :  { %v1467_v42 = vmul.f32 %v1599_v58, %v1459_v0 }
 0x82e   :  { %1468 = vadd.xlane.f32.xlu0 %v1467_v42 }
 0x8b7   :  { %v1469_v55 = vpop.xlane.xlu0 %1468 }
 0x8b8   :  { %v1477_v59 = vadd.f32 %v1600_v53, %v1469_v55 }
 0x8ba   :  { %v1601_v11 = vmul.f32 -1.442695, %v1477_v59 }
 0x8bc   :  { %1801 = vpow2.f32 %v1601_v11 }
 0x8c9   :  { %v1802_v12 = vpop.eup %1801 }
 0x8ca   :  { %v1481_v13 = vadd.f32 1.0, %v1802_v12 }
 0x8cc   :  { %1803 = vrcp.f32 %v1481_v13 }
 0x8d9   :  { %v1804_v14 = vpop.eup %1803 }
 0x8da   :  { %1500 = vperm.xlu1 %1614, %v1804_v14   ;;  %vm1484_vm1 = vcmp.ge.f32.partialorder %v1804_v14, 0.5 }
 0x8db   :  { %v1602_v17 = vsel %vm1484_vm1, 1.0, %v1931_v16 }
 0x8dc   :  { %1494 = vperm.xlu0 %1613, %v1602_v17  }
 0x8de   :  { %1506 = vperm.xlu1 %1614, %v1477_v59  }
 0x955   :  { %v1501_v33 = vpop.permute.xlu1 %1500 }
 0x957   :  { %v1495_v20 = vpop.permute.xlu0 %1494 }
 0x958   :  { %v1497_v34 = vsel %vm1491_vm2, %v1495_v20, 0.0 }
 0x959   :  { %v1503_v21 = vsel %vm1490_vm3, %v1501_v33, %v1497_v34  ;;  %v1507_v36 = vpop.permute.xlu1 %1506 }
 0x95a   :  { %v1509_v22 = vsel %vm1489_vm4, %v1507_v36, %v1503_v21 }
 0x95b   :  { %1510 = vst [vmem:[#allocation10] sm:$0xff] %v1509_v22 }
 0x95c   :  { %1908 = shalt.err (!%p1905_p5)
}
 0x95d   :  { %1520 = dma.vmem_to_hbm [thread:$0]  %s1518_s17, 128, %s2555_s6, [#allocation6]  }
 0x95e   :  { %1921 = dma.done.wait [#allocation6], 128  }
 0x95f   :  { %1922 = vsyncadd [#allocation6], 4294967168 }
 0x960   :  { %1524 = vsyncpa [#allocation5], 1 }
 0x961   :  { %1525 = vsyncpa [#allocation8], 1 }
 0x962   :  { %1526 = vsyncpa [#allocation6], 1 }

</bundles_post_ra>
